<compile_context>
chip_gen: v6e
topology: v6e:2x2x1
jax: 0.10.0
libtpu: 0.0.40
codegen_flags: <defaults>
</compile_context>

<pallas_src>
import functools
import math

import jax
import jax.numpy as jnp
from jax import lax
from jax.experimental import pallas as pl
from jax.experimental.pallas import tpu as pltpu


def _round_up(x, m):
    return ((x + m - 1) // m) * m


# ---------------------------------------------------------------------------
# Pallas kernel: 3x3 conv + bias + ReLU on a flat (row-major, padded) spatial
# tile.  The conv is 9 row-shifted views of ONE contiguous window load; each
# view feeds a K=Cin MXU dot against the matching tap of the folded weight,
# accumulated in f32 (no materialized im2col for Cin >= 64).
# ---------------------------------------------------------------------------
def _conv3x3_bias_relu_kernel(x_ref, w_ref, b_ref, o_ref, *,
                              tm, wp, cin, halo_load, use_concat):
    # x_ref: (Mp, Cin)          flat zero-padded NHWC image (resident per n)
    # w_ref: (9*Cin, Cout_pad)  tap-major folded weights (resident)
    # b_ref: (1, Cout_pad)      f32 bias (Cout zero-padded to lane width)
    # o_ref: (tm, Cout_pad)     flat lane-dense output tile
    start = pl.multiple_of(pl.program_id(1) * tm, 8)     # tm % 8 == 0
    xw = x_ref[pl.ds(start, tm + halo_load), :]          # ONE aligned load/step

    taps = [(dy, dx) for dy in range(3) for dx in range(3)]
    if use_concat:
        # Tiny Cin: fold all 9 taps into a single K=9*Cin contraction.
        patches = jnp.concatenate(
            [xw[dy * wp + dx:dy * wp + dx + tm, :] for dy, dx in taps], axis=-1)
        acc = jnp.dot(patches, w_ref[...], preferred_element_type=jnp.float32)
    else:
        # Real channel counts: 9 accumulated K=Cin dots, no im2col buffer.
        acc = None
        for tap, (dy, dx) in enumerate(taps):
            off = dy * wp + dx
            part = jnp.dot(xw[off:off + tm, :],
                           w_ref[tap * cin:(tap + 1) * cin, :],
                           preferred_element_type=jnp.float32)
            acc = part if acc is None else acc + part

    acc = acc + b_ref[...]
    o_ref[...] = jnp.maximum(acc, 0.0).astype(o_ref.dtype)


# ---------------------------------------------------------------------------
# Wrapper for a single scale (one ConvModule of the ChannelMapper).
# ---------------------------------------------------------------------------
def conv_module_forward(x_nchw, weight_oihw, bias, *, max_tile_rows=512,
                        compute_dtype=jnp.bfloat16):
    """ReLU(Conv2d(x, weight, bias, kernel=3, padding=1)), NCHW in / NCHW out."""
    N, Cin, H, W = x_nchw.shape
    Cout = weight_oihw.shape[0]
    out_dtype = x_nchw.dtype
    cdt = jnp.dtype(compute_dtype)

    # Geometry: width padded to a multiple of 8 (sublane-aligned tap offsets),
    # flat output rows padded to a multiple of TM (clean grid, full blocks).
    Wp = _round_up(W + 2, 8)
    M = H * Wp                                     # valid flat output rows
    TM = min(_round_up(M, 8), _round_up(max_tile_rows, 8))
    n_tiles = pl.cdiv(M, TM)
    M_pad = n_tiles * TM
    halo = 2 * Wp + 2                              # extra rows a 3x3 window needs
    halo_load = _round_up(halo, 8)                 # 8-aligned window load length
    Hp = pl.cdiv(M_pad + halo_load, Wp)            # padded input rows (>= H + 3)
    Mp = Hp * Wp                                   # flat padded input rows

    K = 9 * Cin
    Cout_pad = _round_up(Cout, 128)
    use_concat = Cin < 64

    # Layout glue (fused XLA, one HBM pass each way):
    # NCHW -> NHWC, zero pad H:(1, Hp-1-H) W:(1, Wp-1-W), flatten spatial.
    x = jnp.transpose(x_nchw, (0, 2, 3, 1)).astype(cdt)
    x = jnp.pad(x, ((0, 0), (1, Hp - 1 - H), (1, Wp - 1 - W), (0, 0)))
    x = x.reshape(N, Mp, Cin)

    # OIHW -> (tap-major 9*Cin, Cout); Cout zero-padded to a lane multiple.
    w = jnp.transpose(weight_oihw, (2, 3, 1, 0)).reshape(K, Cout).astype(cdt)
    w = jnp.pad(w, ((0, 0), (0, Cout_pad - Cout)))
    b = jnp.pad(bias.astype(jnp.float32), (0, Cout_pad - Cout)).reshape(1, Cout_pad)

    # VMEM budget derived from the actual buffers (clamped: fits v7x's 64 MiB).
    csz = cdt.itemsize
    osz = jnp.dtype(out_dtype).itemsize
    vmem_need = (2 * Mp * Cin * csz                 # image (double-buffered over n)
                 + K * Cout_pad * csz               # weights (single buffer)
                 + Cout_pad * 4                     # bias
                 + 2 * TM * Cout_pad * osz          # output tile (double-buffered)
                 + (TM + halo_load) * Cin * csz     # in-kernel window load
                 + TM * Cout_pad * 4)               # f32 accumulator
    if use_concat:
        vmem_need += TM * K * csz                   # tiny-Cin im2col patches
    vmem_limit = int(min(max(vmem_need * 3 // 2 + (2 << 20), 16 << 20), 64 << 20))

    kernel = functools.partial(
        _conv3x3_bias_relu_kernel, tm=TM, wp=Wp, cin=Cin,
        halo_load=halo_load, use_concat=use_concat)

    def build(single_buffer_consts):
        const_kw = (dict(pipeline_mode=pl.Buffered(1))
                    if single_buffer_consts else {})
        return pl.pallas_call(
            kernel,
            out_shape=jax.ShapeDtypeStruct((N, M_pad, Cout_pad), out_dtype),
            grid=(N, n_tiles),
            in_specs=[
                # Full flat image: resident across the m-tile axis
                # (index_map constant in t -> no re-DMA between m tiles).
                pl.BlockSpec((None, Mp, Cin), lambda n, t: (n, 0, 0)),
                # Weights / bias resident across the whole grid.
                pl.BlockSpec((K, Cout_pad), lambda n, t: (0, 0), **const_kw),
                pl.BlockSpec((1, Cout_pad), lambda n, t: (0, 0), **const_kw),
            ],
            out_specs=pl.BlockSpec((None, TM, Cout_pad), lambda n, t: (n, t, 0)),
            compiler_params=pltpu.CompilerParams(
                # Batch parallel / m-tiles arbitrary: a 2-TC part (v7x) shards
                # on n so the resident image is not DMA'd twice per element.
                dimension_semantics=("parallel", "arbitrary"),
                vmem_limit_bytes=vmem_limit),
        )

    try:
        out_flat = build(True)(x, w, b)
    except Exception:
        # pipeline_mode=Buffered(1) is a pure VMEM-headroom optimization; fall
        # back to default double buffering if this jax/Mosaic rejects it.
        out_flat = build(False)(x, w, b)

    # Drop row padding / junk columns / Cout padding, back to NCHW.
    out = out_flat[:, :M, :Cout].reshape(N, H, Wp, Cout)[:, :, :W, :]
    return jnp.transpose(out, (0, 3, 1, 2))


# ---------------------------------------------------------------------------
# ChannelMapper: one ConvModule per input scale.
# ---------------------------------------------------------------------------
def make_channel_mapper_params(key, in_channels, out_channels, kernel_size=3):
    """Deterministic xavier-uniform-ish init matching nn.Conv2d shapes."""
    params = []
    for i, cin in enumerate(in_channels):
        k_w, k_b = jax.random.split(jax.random.fold_in(key, i))
        fan_in = cin * kernel_size * kernel_size
        fan_out = out_channels * kernel_size * kernel_size
        limit = math.sqrt(6.0 / (fan_in + fan_out))
        w = jax.random.uniform(
            k_w, (out_channels, cin, kernel_size, kernel_size),
            minval=-limit, maxval=limit, dtype=jnp.float32)
        b = jax.random.uniform(
            k_b, (out_channels,), minval=-0.1, maxval=0.1, dtype=jnp.float32)
        params.append((w, b))
    return params


def channel_mapper_forward(inputs, params, *, max_tile_rows=512,
                           compute_dtype=jnp.bfloat16):
    assert len(inputs) == len(params)
    return tuple(
        conv_module_forward(x, w, b, max_tile_rows=max_tile_rows,
                            compute_dtype=compute_dtype)
        for x, (w, b) in zip(inputs, params))


# ---------------------------------------------------------------------------
# Reference (pure JAX, full-precision) for correctness checking.
# ---------------------------------------------------------------------------
def _ref_conv_module(x_nchw, w_oihw, b):
    y = lax.conv_general_dilated(
        x_nchw, w_oihw, window_strides=(1, 1), padding=((1, 1), (1, 1)),
        dimension_numbers=("NCHW", "OIHW", "NCHW"),
        precision=lax.Precision.HIGHEST)
    return jnp.maximum(y + b[None, :, None, None], 0.0)


if __name__ == "__main__":
    key = jax.random.PRNGKey(0)

    # Small multi-scale NCHW inputs consistent with the module; the third scale
    # uses Cin=64 to exercise the per-tap accumulated-dot (non-im2col) path.
    in_channels = [4, 8, 64]
    out_channels = 16
    spatials = [16, 8, 8]
    batch = 2

    k_in, k_par = jax.random.split(key)
    inputs = []
    for i, (c, s) in enumerate(zip(in_channels, spatials)):
        inputs.append(jax.random.normal(
            jax.random.fold_in(k_in, i), (batch, c, s, s), dtype=jnp.float32))

    params = make_channel_mapper_params(k_par, in_channels, out_channels)

    # max_tile_rows=128 so the largest scale exercises the multi-tile path.
    outs_bf16 = channel_mapper_forward(inputs, params, max_tile_rows=128)
    outs_bf16 = jax.block_until_ready(outs_bf16)
    outs_f32 = channel_mapper_forward(inputs, params, max_tile_rows=128,
                                      compute_dtype=jnp.float32)
    outs_f32 = jax.block_until_ready(outs_f32)

    # Sanity check against the pure-JAX reference (bf16 path gets a looser
    # tolerance; structural bugs would produce O(1) errors and still fail).
    for x, (w, b), o_bf, o_f in zip(inputs, params, outs_bf16, outs_f32):
        ref = _ref_conv_module(x, w, b)
        assert o_bf.shape == (batch, out_channels, x.shape[2], x.shape[3])
        assert o_f.shape == ref.shape
        assert jnp.allclose(o_f, ref, atol=1e-2, rtol=1e-3), "f32 mismatch vs reference"
        assert jnp.allclose(o_bf, ref, atol=1e-1, rtol=5e-2), "bf16 mismatch vs reference"

    print("KERNEL_OK")
</pallas_src>

<mosaic_0001>
module attributes {stable_mosaic.version = 11 : i64} {
  func.func @_conv3x3_bias_relu_kernel(%arg0: i32, %arg1: i32, %arg2: memref<1x456x4xbf16, #tpu.memory_space<vmem>>, %arg3: memref<36x128xbf16, #tpu.memory_space<vmem>>, %arg4: memref<1x128xf32, #tpu.memory_space<vmem>>, %arg5: memref<1x128x128xf32, #tpu.memory_space<vmem>>) attributes {dimension_semantics = [#tpu.dimension_semantics<parallel>, #tpu.dimension_semantics<arbitrary>], iteration_bounds = array<i64: 2, 3>, scalar_prefetch = 0 : i64, scratch_operands = 0 : i64, tpu.core_type = #tpu.core_type<tc>, window_params = [{transform_indices = @transform_0, window_bounds = array<i64: 1, 456, 4>}, {pipeline_mode = #tpu.pipeline_mode<synchronous>, transform_indices = @transform_1, window_bounds = array<i64: 36, 128>}, {pipeline_mode = #tpu.pipeline_mode<synchronous>, transform_indices = @transform_2, window_bounds = array<i64: 1, 128>}, {transform_indices = @transform_3, window_bounds = array<i64: 1, 128, 128>}]} {
    %c128_i32 = arith.constant 128 : i32
    %0 = arith.muli %arg1, %c128_i32 : i32
    %1 = tpu.assume_multiple %0, 8 : i32
    %c0 = arith.constant 0 : index
    %2 = arith.index_cast %1 : i32 to index
    %c0_0 = arith.constant 0 : index
    %3 = vector.load %arg2[%c0, %2, %c0_0] : memref<1x456x4xbf16, #tpu.memory_space<vmem>>, vector<1x184x4xbf16>
    %4 = vector.shape_cast %3 : vector<1x184x4xbf16> to vector<184x4xbf16>
    %5 = vector.extract_strided_slice %4 {offsets = [0, 0], sizes = [128, 4], strides = [1, 1]} : vector<184x4xbf16> to vector<128x4xbf16>
    %6 = vector.extract_strided_slice %4 {offsets = [1, 0], sizes = [128, 4], strides = [1, 1]} : vector<184x4xbf16> to vector<128x4xbf16>
    %7 = vector.extract_strided_slice %4 {offsets = [2, 0], sizes = [128, 4], strides = [1, 1]} : vector<184x4xbf16> to vector<128x4xbf16>
    %8 = vector.extract_strided_slice %4 {offsets = [24, 0], sizes = [128, 4], strides = [1, 1]} : vector<184x4xbf16> to vector<128x4xbf16>
    %9 = vector.extract_strided_slice %4 {offsets = [25, 0], sizes = [128, 4], strides = [1, 1]} : vector<184x4xbf16> to vector<128x4xbf16>
    %10 = vector.extract_strided_slice %4 {offsets = [26, 0], sizes = [128, 4], strides = [1, 1]} : vector<184x4xbf16> to vector<128x4xbf16>
    %11 = vector.extract_strided_slice %4 {offsets = [48, 0], sizes = [128, 4], strides = [1, 1]} : vector<184x4xbf16> to vector<128x4xbf16>
    %12 = vector.extract_strided_slice %4 {offsets = [49, 0], sizes = [128, 4], strides = [1, 1]} : vector<184x4xbf16> to vector<128x4xbf16>
    %13 = vector.extract_strided_slice %4 {offsets = [50, 0], sizes = [128, 4], strides = [1, 1]} : vector<184x4xbf16> to vector<128x4xbf16>
    %14 = tpu.concatenate %5, %6, %7, %8, %9, %10, %11, %12, %13 in 1 : vector<128x4xbf16>, vector<128x4xbf16>, vector<128x4xbf16>, vector<128x4xbf16>, vector<128x4xbf16>, vector<128x4xbf16>, vector<128x4xbf16>, vector<128x4xbf16>, vector<128x4xbf16> -> vector<128x36xbf16>
    %c0_1 = arith.constant 0 : index
    %c0_2 = arith.constant 0 : index
    %15 = vector.load %arg3[%c0_1, %c0_2] : memref<36x128xbf16, #tpu.memory_space<vmem>>, vector<36x128xbf16>
    %cst = arith.constant dense<0.000000e+00> : vector<128x128xf32>
    %16 = tpu.matmul %14, %15, %cst {dimension_numbers = #tpu.dot_dimension_numbers<[1], [0], [0], [1], [0, 0, 1, 1], [], []>} : vector<128x36xbf16>, vector<36x128xbf16>, vector<128x128xf32> -> vector<128x128xf32>
    %c0_3 = arith.constant 0 : index
    %c0_4 = arith.constant 0 : index
    %17 = vector.load %arg4[%c0_3, %c0_4] : memref<1x128xf32, #tpu.memory_space<vmem>>, vector<1x128xf32>
    %18 = vector.broadcast %17 : vector<1x128xf32> to vector<128x128xf32>
    %19 = arith.addf %16, %18 : vector<128x128xf32>
    %cst_5 = arith.constant 0.000000e+00 : f32
    %20 = vector.broadcast %cst_5 : f32 to vector<128x128xf32>
    %21 = arith.maximumf %19, %20 : vector<128x128xf32>
    %c0_6 = arith.constant 0 : index
    %c0_7 = arith.constant 0 : index
    %c0_8 = arith.constant 0 : index
    %22 = vector.load %arg5[%c0_6, %c0_7, %c0_8] : memref<1x128x128xf32, #tpu.memory_space<vmem>>, vector<1x128x128xf32>
    %23 = vector.shape_cast %22 : vector<1x128x128xf32> to vector<128x128xf32>
    %24 = vector.shape_cast %21 : vector<128x128xf32> to vector<1x128x128xf32>
    tpu.vector_store %arg5[%c0_6, %c0_7, %c0_8], %24 {strides = array<i32>} : memref<1x128x128xf32, #tpu.memory_space<vmem>>, vector<1x128x128xf32>,
    return
  }
  func.func @transform_0(%arg0: i32, %arg1: i32) -> (i32, i32, i32) {
    %c0_i32 = arith.constant 0 : i32
    %c0_i32_0 = arith.constant 0 : i32
    %c0_i32_1 = arith.constant 0 : i32
    return %arg0, %c0_i32, %c0_i32_0 : i32, i32, i32
  }
  func.func @transform_1(%arg0: i32, %arg1: i32) -> (i32, i32) {
    %c0_i32 = arith.constant 0 : i32
    %c0_i32_0 = arith.constant 0 : i32
    %c0_i32_1 = arith.constant 0 : i32
    return %c0_i32, %c0_i32_0 : i32, i32
  }
  func.func @transform_2(%arg0: i32, %arg1: i32) -> (i32, i32) {
    %c0_i32 = arith.constant 0 : i32
    %c0_i32_0 = arith.constant 0 : i32
    %c0_i32_1 = arith.constant 0 : i32
    return %c0_i32, %c0_i32_0 : i32, i32
  }
  func.func @transform_3(%arg0: i32, %arg1: i32) -> (i32, i32, i32) {
    %c0_i32 = arith.constant 0 : i32
    %c0_i32_0 = arith.constant 0 : i32
    return %arg0, %arg1, %c0_i32 : i32, i32, i32
  }
}

module attributes {stable_mosaic.version = 11 : i64} {
  func.func @_conv3x3_bias_relu_kernel(%arg0: i32, %arg1: i32, %arg2: memref<1x456x4xbf16, #tpu.memory_space<vmem>>, %arg3: memref<36x128xbf16, #tpu.memory_space<vmem>>, %arg4: memref<1x128xf32, #tpu.memory_space<vmem>>, %arg5: memref<1x128x128xf32, #tpu.memory_space<vmem>>) attributes {dimension_semantics = [#tpu.dimension_semantics<parallel>, #tpu.dimension_semantics<arbitrary>], iteration_bounds = array<i64: 2, 3>, scalar_prefetch = 0 : i64, scratch_operands = 0 : i64, tpu.core_type = #tpu.core_type<tc>, window_params = [{transform_indices = @transform_0, window_bounds = array<i64: 1, 456, 4>}, {pipeline_mode = #tpu.pipeline_mode<synchronous>, transform_indices = @transform_1, window_bounds = array<i64: 36, 128>}, {pipeline_mode = #tpu.pipeline_mode<synchronous>, transform_indices = @transform_2, window_bounds = array<i64: 1, 128>}, {transform_indices = @transform_3, window_bounds = array<i64: 1, 128, 128>}]} {
    %c128_i32 = arith.constant 128 : i32
    %0 = arith.muli %arg1, %c128_i32 : i32
    %1 = tpu.assume_multiple %0, 8 : i32
    %c0 = arith.constant 0 : index
    %2 = arith.index_cast %1 : i32 to index
    %c0_0 = arith.constant 0 : index
    %3 = vector.load %arg2[%c0, %2, %c0_0] : memref<1x456x4xbf16, #tpu.memory_space<vmem>>, vector<1x184x4xbf16>
    %4 = vector.shape_cast %3 : vector<1x184x4xbf16> to vector<184x4xbf16>
    %5 = vector.extract_strided_slice %4 {offsets = [0, 0], sizes = [128, 4], strides = [1, 1]} : vector<184x4xbf16> to vector<128x4xbf16>
    %6 = vector.extract_strided_slice %4 {offsets = [1, 0], sizes = [128, 4], strides = [1, 1]} : vector<184x4xbf16> to vector<128x4xbf16>
    %7 = vector.extract_strided_slice %4 {offsets = [2, 0], sizes = [128, 4], strides = [1, 1]} : vector<184x4xbf16> to vector<128x4xbf16>
    %8 = vector.extract_strided_slice %4 {offsets = [24, 0], sizes = [128, 4], strides = [1, 1]} : vector<184x4xbf16> to vector<128x4xbf16>
    %9 = vector.extract_strided_slice %4 {offsets = [25, 0], sizes = [128, 4], strides = [1, 1]} : vector<184x4xbf16> to vector<128x4xbf16>
    %10 = vector.extract_strided_slice %4 {offsets = [26, 0], sizes = [128, 4], strides = [1, 1]} : vector<184x4xbf16> to vector<128x4xbf16>
    %11 = vector.extract_strided_slice %4 {offsets = [48, 0], sizes = [128, 4], strides = [1, 1]} : vector<184x4xbf16> to vector<128x4xbf16>
    %12 = vector.extract_strided_slice %4 {offsets = [49, 0], sizes = [128, 4], strides = [1, 1]} : vector<184x4xbf16> to vector<128x4xbf16>
    %13 = vector.extract_strided_slice %4 {offsets = [50, 0], sizes = [128, 4], strides = [1, 1]} : vector<184x4xbf16> to vector<128x4xbf16>
    %14 = tpu.concatenate %5, %6, %7, %8, %9, %10, %11, %12, %13 in 1 : vector<128x4xbf16>, vector<128x4xbf16>, vector<128x4xbf16>, vector<128x4xbf16>, vector<128x4xbf16>, vector<128x4xbf16>, vector<128x4xbf16>, vector<128x4xbf16>, vector<128x4xbf16> -> vector<128x36xbf16>
    %c0_1 = arith.constant 0 : index
    %c0_2 = arith.constant 0 : index
    %15 = vector.load %arg3[%c0_1, %c0_2] : memref<36x128xbf16, #tpu.memory_space<vmem>>, vector<36x128xbf16>
    %cst = arith.constant dense<0.000000e+00> : vector<128x128xf32>
    %16 = tpu.matmul %14, %15, %cst {dimension_numbers = #tpu.dot_dimension_numbers<[1], [0], [0], [1], [0, 0, 1, 1], [], []>} : vector<128x36xbf16>, vector<36x128xbf16>, vector<128x128xf32> -> vector<128x128xf32>
    %c0_3 = arith.constant 0 : index
    %c0_4 = arith.constant 0 : index
    %17 = vector.load %arg4[%c0_3, %c0_4] : memref<1x128xf32, #tpu.memory_space<vmem>>, vector<1x128xf32>
    %18 = vector.broadcast %17 : vector<1x128xf32> to vector<128x128xf32>
    %19 = arith.addf %16, %18 : vector<128x128xf32>
    %cst_5 = arith.constant 0.000000e+00 : f32
    %20 = vector.broadcast %cst_5 : f32 to vector<128x128xf32>
    %21 = arith.maximumf %19, %20 : vector<128x128xf32>
    %c0_6 = arith.constant 0 : index
    %c0_7 = arith.constant 0 : index
    %c0_8 = arith.constant 0 : index
    %22 = vector.load %arg5[%c0_6, %c0_7, %c0_8] : memref<1x128x128xf32, #tpu.memory_space<vmem>>, vector<1x128x128xf32>
    %23 = vector.shape_cast %22 : vector<1x128x128xf32> to vector<128x128xf32>
    %24 = vector.shape_cast %21 : vector<128x128xf32> to vector<1x128x128xf32>
    tpu.vector_store %arg5[%c0_6, %c0_7, %c0_8], %24 {strides = array<i32>} : memref<1x128x128xf32, #tpu.memory_space<vmem>>, vector<1x128x128xf32>,
    return
  }
  func.func @transform_0(%arg0: i32, %arg1: i32) -> (i32, i32, i32) {
    %c0_i32 = arith.constant 0 : i32
    %c0_i32_0 = arith.constant 0 : i32
    %c0_i32_1 = arith.constant 0 : i32
    return %arg0, %c0_i32, %c0_i32_0 : i32, i32, i32
  }
  func.func @transform_1(%arg0: i32, %arg1: i32) -> (i32, i32) {
    %c0_i32 = arith.constant 0 : i32
    %c0_i32_0 = arith.constant 0 : i32
    %c0_i32_1 = arith.constant 0 : i32
    return %c0_i32, %c0_i32_0 : i32, i32
  }
  func.func @transform_2(%arg0: i32, %arg1: i32) -> (i32, i32) {
    %c0_i32 = arith.constant 0 : i32
    %c0_i32_0 = arith.constant 0 : i32
    %c0_i32_1 = arith.constant 0 : i32
    return %c0_i32, %c0_i32_0 : i32, i32
  }
  func.func @transform_3(%arg0: i32, %arg1: i32) -> (i32, i32, i32) {
    %c0_i32 = arith.constant 0 : i32
    %c0_i32_0 = arith.constant 0 : i32
    return %arg0, %arg1, %c0_i32 : i32, i32, i32
  }
}

</mosaic_0001>

<bundles_post_ra>
// kernel: tpu_custom_call.1
= control target key start
LH: loop header
LB: loop body
LE: loop exit
PB: predicated region body
PF: predicated region fallthrough
CT: control target
= control target key end

     0   :  { %8 = vsyncpa [#allocation3], 0  ;;  %s1980_s0 = inlined_call_operand.vmem [shape: bf16[2,456,4], index: 0, kind: input, shape index: {}]   ;;  %s1981_s1 = inlined_call_operand.vmem [shape: bf16[36,128], index: 1, kind: input, shape index: {}]   ;;  %s1982_s2 = inlined_call_operand.vmem [shape: f32[1,128], index: 2, kind: input, shape index: {}]   ;;  %s1983_s3 = inlined_call_operand.hbm [shape: f32[2,384,128], index: 3, kind: output, shape index: {}]  }
   0x1   :  { %10 = vsyncpa [#allocation3 + $0x1], 0  ;;  %s1345_s12 = smov 0   ;;  %s1347_s13 = smov 0  }
   0x2   :  { %s1349_s14 = smov 0   ;;  %s1351_s15 = smov 0  }
   0x3   :  { %s1353_s16 = smov 0   ;;  %s1355_s17 = smov 0  }
   0x4   :  { %s1357_s18 = smov 0   ;;  %s1359_s19 = smov 0  }
   0x5 LB: > { %s1025_s20 = sadd.s32 4294967295, %s1313_s19   ;;  %s1026_s21 = sadd.s32 4294967294, %s1313_s19   ;;  %s1313_s19 = sphi %s1359_s19, %s16_s19   ;;  %s1309_s18 = sphi %s1357_s18, %s1992_s18   ;;  %s1305_s17 = sphi %s1355_s17, %s1991_s17   ;;  %s1301_s16 = sphi %s1353_s16, %s1990_s16   ;;  %s1297_s15 = sphi %s1351_s15, %s1989_s15   ;;  %s1293_s14 = sphi %s1349_s14, %s1988_s14   ;;  %s1289_s13 = sphi %s1347_s13, %s1987_s13   ;;  %s1285_s12 = sphi %s1345_s12, %s1986_s12  }
   0x6   : > { %s25_s22 = sadd.s32 1, %s1305_s17  ;;  %s28_s23 = sadd.s32 1, %s1309_s18 }
   0x7   : > { %p26_p0 = scmp.ge.s32.totalorder %s25_s22, 3  ;;  %p115_p1 = scmp.ne.s32.totalorder %s1293_s14, %s1289_s13 }
   0x8   : > { %p116_p2 = scmp.eq.s32.totalorder %s1025_s20, 5  ;;  %p121_p5 = scmp.ne.s32.totalorder %s1289_s13, %s1285_s12 }
   0x9   : > { %s1994_s22 = smov (%p26_p0, %s25_s22), 0  ;;  %s1996_s23 = smov (!%p26_p0, %s28_s23), %s1309_s18 }
   0xa   : > { %s101_s24 = ssub.s32 %s1305_s17, %s1994_s22  ;;  %p1396_p3 = por %p116_p2, %p115_p1 }
   0xb   : > { %p30_p4 = scmp.ge.s32.totalorder %s1996_s23, 2  ;;  %p122_p6 = scmp.eq.s32.totalorder %s1026_s21, 5 }
   0xc   : > { %p1029_p7 = scmp.ge.s32.totalorder %s1313_s19, 1  ;;  %p154_p9 = scmp.lt.s32.totalorder %s1313_s19, 7 }
   0xd   : > { %s1998_s23 = smov (%p30_p4, %s1996_s23), 0  ;;  %p1405_p8 = por %p122_p6, %p121_p5 }
   0xe   : > { %s100_s27 = ssub.s32 %s1309_s18, %s1998_s23  ;;  %s105_s28 = sadd.s32 1, %s1293_s14 }
   0xf   : > { %s102_s29 = sor.u32 %s101_s24, %s100_s27  ;;  %p155_p10 = pnand %p1029_p7, %p154_p9 }
  0x10   : > { %p103_p11 = scmp.eq.s32.totalorder %s102_s29, 0  ;;  %p178_p12 = scmp.lt.s32.totalorder (!%p155_p10), %s1301_s16, 1 }
  0x11   : > { %158 = sbr.rel (%p155_p10) target bundleno = 490 (0x1ea), region = 32  ;;  %s1032_s4 = sshll.u32 (!%p155_p10), %s1297_s15, 7 }
  0x12   : > { %s1414_s30 = scalar_select %p103_p11, %s1293_s14, %s105_s28  }
  0x13   : > { %s186_s5 = sshra.s32 (!%p155_p10), %s1032_s4, 3  ;;  %s1315_s21 = smov (!%p155_p10), 12  }
  0x14   : > { %s1033_s8 = sshll.u32 (!%p155_p10), %s186_s5, 2  ;;  %s1316_s24 = smov (!%p155_p10), 8  }
  0x15   : > { %s1317_s27 = smov (!%p155_p10), 4   ;;  %s1318_s28 = smov (!%p155_p10), 16  }
  0x16   : > { %s179_s6 = scalar_select %p178_p12, %s1301_s16, 1  ;;  %vm341_vm0 = vcmask 1046528   ;;  %vm256_vm1 = vsmask.f32 7424  ;;  %vm798_vm2 = vcmask 1041408   ;;  %vm618_vm3 = vcmask 31744  }
  0x17   : > { %s1319_s29 = smov 20   ;;  %vm635_vm4 = vcmask 64512   ;;  %vm652_vm5 = vcmask 97280   ;;  %vm669_vm6 = vcmask 130048   ;;  %vm686_vm7 = vcmask 162816   ;;  %s1115_s5 = smul.u32 48, %s1301_s16 }
  0x18   : > { %s1114_s7 = smul.u32 228, %s179_s6  ;;  %s1320_s6 = smov 24   ;;  %vm703_vm8 = vcmask 195584   ;;  %vm720_vm9 = vcmask 228352   ;;  %vm737_vm10 = vcmask 261120   ;;  %vm781_vm11 = vcmask 293888  }
  0x1a   : > { %s182_s11 = scalar_lea.vmem %s1980_s0, %s1114_s7 }
  0x1b   : > { %s1422_s20 = scalar_lea.vmem %s182_s11, %s1033_s8  ;;  %s1321_s11 = smov 28  }
  0x1c   : > { %v201_v0 = vld [vmem:[%s1422_s20 + $0x2c] sm:$0xf]  ;;  %v202_v1 = vld [vmem:[%s1422_s20 + $0x30] sm:$0xf]  ;;  %v203_v2 = vld [vmem:[%s1422_s20 + $0x34] sm:$0xf] }
  0x1d   : > { %v1427_v3 = vcombine.low %v202_v1, %v203_v2  ;;  %v1429_v4 = vcombine.low %v201_v0, %v202_v1  ;;  %v1432_v5 = vld [vmem:[%s1422_s20 + $0x28] sm:$0xf]  ;;  %v193_v6 = vld [vmem:[%s1422_s20 + $0xc] sm:$0xf]  ;;  %v194_v7 = vld [vmem:[%s1422_s20 + $0x10] sm:$0xf] }
  0x1e   : > { %v1437_v8 = vcombine.low %v1432_v5, %v201_v0  ;;  %v195_v9 = vld [vmem:[%s1422_s20 + $0x14] sm:$0xf]  ;;  %v1440_v10 = vcombine.low %v193_v6, %v194_v7  ;;  %v192_v11 = vld [vmem:[%s1422_s20 + $0x8] sm:$0xf]  ;;  %v198_v12 = vld [vmem:[%s1422_s20 + $0x20] sm:$0xf] }
  0x1f   : > { %395 = vrot.lane.b32.xlu1 %v1429_v4, %s1315_s21  ;;  %v1446_v13 = vcombine.low %v194_v7, %v195_v9  ;;  %v1448_v14 = vcombine.low %v192_v11, %v193_v6  ;;  %v1451_v15 = vld [vmem:[%s1422_s20 + $0x24] sm:$0xf]  ;;  %v353_v21 = vrot.slane %v1427_v3, 1  ;;  %v305_v38 = vshll.u32 %v1427_v3, 16  ;;  %v204_v43 = vld [vmem:[%s1422_s20 + $0x38] sm:$0xf] }
  0x20   : > { %387 = vrot.lane.b32.xlu0 %v1440_v10, %s1315_s21  ;;  %v1456_v16 = vcombine.low %v198_v12, %v1451_v15  ;;  %v351_v17 = vrot.slane %v1437_v8, 1  ;;  %v1460_v18 = vld [vmem:[%s1422_s20] sm:$0xff]   ;;  %v297_v19 = vshll.u32 %v1437_v8, 16  ;;  %v301_v37 = vshrl.u32 %v1437_v8, 16  ;;  %v196_v45 = vld [vmem:[%s1422_s20 + $0x18] sm:$0xf] }
  0x21   : > { %v343_v20 = vrot.slane %v1448_v14, 1  ;;  %v265_v22 = vshll.u32 %v1448_v14, 16  ;;  %v269_v23 = vshrl.u32 %v1448_v14, 16  ;;  %v342_v25 = vrot.slane %v1460_v18, 1  ;;  %v205_v50 = vld [vmem:[%s1422_s20 + $0x3c] sm:$0xf] }
  0x22   : > { %v349_v24 = vrot.slane %v1456_v16, 1  ;;  %v345_v26 = vrot.slane %v1446_v13, 1  ;;  %v273_v27 = vshll.u32 %v1446_v13, 16  ;;  %v258_v29 = vshrl.u32 %v1460_v18, 16  ;;  %v1509_v51 = vld [vmem:[%s1422_s20 + $0x40] sm:$0xf] }
  0x23   : > { %v267_v28 = vrot.slane %v265_v22, 1  ;;  %v260_v30 = vshll.u32 %v1460_v18, 16  ;;  %v344_v32 = vsel %vm341_vm0, %v342_v25, %v343_v20  ;;  %v299_v34 = vrot.slane %v297_v19, 1  ;;  %v197_v55 = vld [vmem:[%s1422_s20 + $0x1c] sm:$0xf] }
  0x24   : > { %v1476_v31 = vsel %vm341_vm0, %v349_v24, %v351_v17  ;;  %v1479_v33 = vrot.slane %v273_v27, 1  ;;  %359 = vrot.lane.b32.xlu0 %v344_v32, %s1316_s24  ;;  %v1489_v39 = vsel %vm341_vm0, %v351_v17, %v353_v21  ;;  %v346_v40 = vsel %vm341_vm0, %v343_v20, %v345_v26  ;;  %v1563_v32 = vld [vmem:[%s1422_s20 + $0x4c] sm:$0xf] }
  0x25   : > { %367 = vrot.lane.b32.xlu1 %v1476_v31, %s1316_s24  ;;  %v271_v35 = vor.u32 %v269_v23, %v267_v28  ;;  %v262_v36 = vrot.slane %v260_v30, 1  ;;  %v289_v41 = vshll.u32 %v1456_v16, 16  ;;  %v293_v42 = vshrl.u32 %v1456_v16, 16  ;;  %v1560_v30 = vld [vmem:[%s1422_s20 + $0x48] sm:$0xf] }
  0x26   : > { %v303_v46 = vor.u32 %v301_v37, %v299_v34  ;;  %v1498_v47 = vrot.slane %v305_v38, 1  ;;  %v1511_v52 = vcombine.low %v203_v2, %v204_v43  ;;  %v1516_v56 = vcombine.low %v195_v9, %v196_v45 }
  0x27   : > { %v263_v44 = vor.u32 %v262_v36, %v258_v29  ;;  %v1500_v48 = vrot.slane %v289_v41, 1  ;;  %v276_v49 = vsel %vm256_vm1, %v271_v35, %v1479_v33  ;;  %v438_v57 = vshll.u32 %v1429_v4, 16 }
  0x28   : > { %361 = vrot.lane.b32.xlu0 %v346_v40, %s1316_s24  ;;  %v409_v58 = vshll.u32 %v1440_v10, 16  ;;  %v1522_v59 = vsel %vm256_vm1, %v303_v46, %v1498_v47  ;;  %v1525_v60 = vcombine.low %v205_v50, %v1509_v51  ;;  %v1529_v61 = vcombine.low %v197_v55, %v198_v12 }
  0x29   : > { %369 = vrot.lane.b32.xlu1 %v1489_v39, %s1316_s24  ;;  %v268_v53 = vsel %vm256_vm1, %v263_v44, %v267_v28  ;;  %v295_v54 = vor.u32 %v293_v42, %v1500_v48  ;;  %v442_v62 = vshrl.u32 %v1429_v4, 16  ;;  %v446_v63 = vshll.u32 %v1511_v52, 16 }
  0x2a   : > { %v407_v0 = vshrl.u32 %v1440_v10, 16  ;;  %v1537_v2 = vrot.slane %v438_v57, 1  ;;  %v411_v6 = vrot.slane %v409_v58, 1  ;;  %v414_v7 = vshll.u32 %v1516_v56, 16  ;;  %v1613_v57 = vld [vmem:[%s1422_s20 + $0x44] sm:$0xf] }
  0x2b   : > { %v1535_v1 = vsel %vm256_vm1, %v295_v54, %v299_v34  ;;  %v448_v9 = vrot.slane %v446_v63, 1  ;;  %v450_v11 = vshrl.u32 %v1511_v52, 16  ;;  %v454_v12 = vshll.u32 %v1525_v60, 16 }
  0x2c   : > { %325 = vrot.lane.b32.xlu0 %v268_v53, %s1317_s27  ;;  %v418_v17 = vshrl.u32 %v1516_v56, 16  ;;  %v444_v19 = vor.u32 %v442_v62, %v1537_v2  ;;  %v412_v20 = vor.u32 %v411_v6, %v407_v0  ;;  %v416_v22 = vrot.slane %v414_v7, 1 }
  0x2d   : > { %327 = vrot.lane.b32.xlu1 %v276_v49, %s1317_s27  ;;  %v422_v23 = vshll.u32 %v1529_v61, 16  ;;  %v1549_v25 = vcombine.low %v204_v43, %v205_v50  ;;  %v1553_v27 = vcombine.low %v196_v45, %v197_v55  ;;  %v452_v28 = vor.u32 %v450_v11, %v448_v9 }
  0x2e   : > { %v1557_v29 = vrot.slane %v454_v12, 1  ;;  %v449_v34 = vsel %vm256_vm1, %v444_v19, %v448_v9  ;;  %v417_v35 = vsel %vm256_vm1, %v412_v20, %v416_v22  ;;  %v420_v36 = vor.u32 %v418_v17, %v416_v22  ;;  %v1217_v19 = vld [vmem:[%s1422_s20 + $0x58] ss:$0 sps:$4 sm:$0xff]  }
  0x2f   : > { %v424_v37 = vrot.slane %v422_v23, 1  ;;  %v1569_v38 = vcombine.low %v1560_v30, %v1563_v32  ;;  %v1572_v40 = vrot.slane %v1549_v25, 1  ;;  %v347_v41 = vrot.slane %v1553_v27, 1 }
  0x30   : > { %333 = vrot.lane.b32.xlu0 %v1535_v1, %s1317_s27  ;;  %v457_v42 = vsel %vm256_vm1, %v452_v28, %v1557_v29  ;;  %v497_v43 = vrot.slane %v1429_v4, 1  ;;  %v499_v44 = vrot.slane %v1511_v52, 1  ;;  %v490_v45 = vrot.slane %v1440_v10, 1 }
  0x31   : > { %335 = vrot.lane.b32.xlu1 %v1522_v59, %s1317_s27  ;;  %v425_v46 = vsel %vm256_vm1, %v420_v36, %v424_v37  ;;  %v491_v49 = vrot.slane %v1516_v56, 1  ;;  %v1588_v50 = vsel %vm341_vm0, %v353_v21, %v1572_v40  ;;  %v1595_v4 = vsel %vm341_vm0, %v345_v26, %v347_v41  ;;  %v1609_v26 = vld [vmem:[%s1422_s20 + $0x50] sm:$0xff]   ;;  %s1322_s20 = smov 32  }
  0x32   : > { %v1600_v10 = vcombine.low %v1451_v15, %v1432_v5  ;;  %v426_v53 = vshrl.u32 %v1529_v61, 16  ;;  %v500_v21 = vsel %vm341_vm0, %v497_v43, %v499_v44  ;;  %v501_v54 = vrot.slane %v1525_v60, 1 }
  0x33   : > { %v493_v55 = vrot.slane %v1529_v61, 1  ;;  %v562_v58 = vshrl.u32 %v1569_v38, 16  ;;  %v313_v63 = vshll.u32 %v1549_v25, 16  ;;  %v1630_v12 = vcombine.low %v1509_v51, %v1613_v57 }
  0x34   : > { %389 = vrot.lane.b32.xlu0 %v1516_v56, %s1315_s21  ;;  %v492_v56 = vsel %vm341_vm0, %v490_v45, %v491_v49  ;;  %v428_v5 = vor.u32 %v426_v53, %v424_v37  ;;  %v430_v15 = vshll.u32 %v1600_v10, 16  ;;  %v434_v62 = vshrl.u32 %v1600_v10, 16 }
  0x35   : > { %397 = vrot.lane.b32.xlu1 %v1511_v52, %s1315_s21  ;;  %v558_v52 = vshll.u32 %v1569_v38, 16  ;;  %v495_v7 = vrot.slane %v1600_v10, 1  ;;  %v502_v9 = vsel %vm341_vm0, %v499_v44, %v501_v54  ;;  %v494_v11 = vsel %vm341_vm0, %v491_v49, %v493_v55 }
  0x36   : > { %v432_v6 = vrot.slane %v430_v15, 1  ;;  %v566_v17 = vshll.u32 %v1609_v26, 16  ;;  %v281_v20 = vshll.u32 %v1553_v27, 16  ;;  %v596_v49 = vrot.slane %v1569_v38, 1 }
  0x37   : > { %v1619_v0 = vrot.slane %v558_v52, 1  ;;  %v1642_v36 = vsel %vm341_vm0, %v493_v55, %v495_v7  ;;  %v1645_v37 = vsel %vm341_vm0, %v495_v7, %v497_v43  ;;  %v574_v52 = vshll.u32 %v1217_v19, 16 }
  0x38   : > { %474 = vrot.lane.b32.xlu0 %v417_v35, %s1318_s28  ;;  %v1636_v22 = vsel %vm256_vm1, %v428_v5, %v432_v6  ;;  %v436_v23 = vor.u32 %v434_v62, %v432_v6  ;;  %v285_v35 = vshrl.u32 %v1553_v27, 16  ;;  %v568_v45 = vrot.slane %v566_v17, 1  ;;  %v1218_v62 = vld [vmem:[%s1981_s1 + $0x10] ss:$0 sps:$4 sm:$0x33]  }
  0x39   : > { %482 = vrot.lane.b32.xlu1 %v449_v34, %s1318_s28  ;;  %v564_v28 = vor.u32 %v562_v58, %v1619_v0  ;;  %v317_v34 = vshrl.u32 %v1549_v25, 16  ;;  %v598_v53 = vrot.slane %v1609_v26, 1  ;;  %v600_v43 = vrot.slane %v1217_v19, 1  ;;  %1112 = vmatprep.subr.msk.bf16.mxu0 %vm798_vm2, %v1218_v62  ;;  %v1219_v19 = vld [vmem:[%s1981_s1 + $0x8] sm:$0xff]  }
  0x3a   : > { %v1651_v44 = vsel %vm256_vm1, %v436_v23, %v1537_v2  ;;  %v283_v55 = vrot.slane %v281_v20, 1  ;;  %v576_v5 = vrot.slane %v574_v52, 1  ;;  %v800_v6 = vsel %vm798_vm2, %v1218_v62, 0  ;;  %1113 = vmatprep.subr.msk.bf16.mxu1 %vm798_vm2, %v1218_v62 }
  0x3b   : > { %v1665_v15 = vsel %vm341_vm0, %v596_v49, %v598_v53  ;;  %v1668_v58 = vsel %vm341_vm0, %v598_v53, %v600_v43  ;;  %v554_v17 = vshrl.u32 %v1630_v12, 16  ;;  %1085 = vmatpush3.bf16.msra.mxu0 %v800_v6  ;;  %1109 = vmatpush3.bf16.msra.mxu1 %v800_v6  ;;  %v1042_v43 = vcombine.low %v1509_v51, %v1509_v51 }
  0x3c   : > { %476 = vrot.lane.b32.xlu0 %v425_v46, %s1318_s28  ;;  %v570_v46 = vshrl.u32 %v1609_v26, 16  ;;  %1086 = vmatprep.subr.bf16.mxu0 %v1219_v19 }
  0x3d   : > { %484 = vrot.lane.b32.xlu1 %v457_v42, %s1318_s28  ;;  %v1647_v42 = vrot.slane %v313_v63, 1  ;;  %1107 = vmatprep.subr.bf16.mxu1 %v1219_v19  ;;  %v357_v51 = vrot.slane %v1042_v43, 1 }
  0x3e   : > { %v572_v2 = vor.u32 %v570_v46, %v568_v45  ;;  %v277_v46 = vshrl.u32 %v1446_v13, 16 }
  0x3f   : > { %v319_v7 = vor.u32 %v317_v34, %v1647_v42  ;;  %1087 = vmatpush3.bf16.msra.mxu0 %v1219_v19  ;;  %1110 = vmatpush3.bf16.msra.mxu1 %v1219_v19  ;;  %v1220_v34 = vld [vmem:[%s1981_s1] sm:$0xff]  }
  0x40   : > { %507 = vrot.lane.b32.xlu0 %v492_v56, %s1319_s29  ;;  %v1660_v56 = vsel %vm256_vm1, %v564_v28, %v568_v45  ;;  %v1678_v63 = vsel %vm256_vm1, %v572_v2, %v576_v5  ;;  %1088 = vmatprep.subr.bf16.mxu0 %v1220_v34  ;;  %v279_v53 = vor.u32 %v277_v46, %v1479_v33  ;;  %v321_v2 = vshll.u32 %v1042_v43, 16 }
  0x41   : > { %515 = vrot.lane.b32.xlu1 %v500_v21, %s1319_s29  ;;  %v550_v21 = vshll.u32 %v1630_v12, 16  ;;  %1108 = vmatprep.subr.bf16.mxu1 %v1220_v34 }
  0x42   : > { %v323_v33 = vrot.slane %v321_v2, 1 }
  0x43   : > { %1089 = vmatpush3.bf16.msra.mxu0 %v1220_v34  ;;  %1111 = vmatpush3.bf16.msra.mxu1 %v1220_v34 }
  0x44   : > { %509 = vrot.lane.b32.xlu0 %v494_v11, %s1319_s29  ;;  %v287_v11 = vor.u32 %v285_v35, %v283_v55  ;;  %v594_v35 = vrot.slane %v1630_v12, 1 }
  0x45   : > { %517 = vrot.lane.b32.xlu1 %v502_v9, %s1319_s29  ;;  %v552_v9 = vrot.slane %v550_v21, 1  ;;  %v284_v21 = vsel %vm256_vm1, %v279_v53, %v283_v55  ;;  %v1051_v55 = vcombine.low %v1563_v32, %v1563_v32 }
  0x46   : > { %v292_v23 = vsel %vm256_vm1, %v287_v11, %v1500_v48  ;;  %v309_v48 = vshrl.u32 %v1427_v3, 16  ;;  %v595_v52 = vsel %vm341_vm0, %v1572_v40, %v594_v35 }
  0x47   : > { %v553_v20 = vsel %vm256_vm1, %v319_v7, %v552_v9  ;;  %v556_v28 = vor.u32 %v554_v17, %v552_v9  ;;  %v505_v6 = vrot.slane %v1051_v55, 1 }
  0x48   : > { %530 = vrot.lane.b32.xlu0 %v1553_v27, %s1320_s6 }
  0x49   : > { %538 = vrot.lane.b32.xlu1 %v1549_v25, %s1320_s6  ;;  %v561_v45 = vsel %vm256_vm1, %v556_v28, %v1619_v0  ;;  %v350_v0 = vsel %vm341_vm0, %v347_v41, %v349_v24  ;;  %v597_v24 = vsel %vm341_vm0, %v594_v35, %v596_v49  ;;  %v358_v41 = vsel %vm341_vm0, %v1572_v40, %v357_v51 }
  0x4c   : > { %532 = vrot.lane.b32.xlu0 %v1456_v16, %s1320_s6 }
  0x4d   : > { %540 = vrot.lane.b32.xlu1 %v1630_v12, %s1320_s6  ;;  %v311_v12 = vor.u32 %v309_v48, %v1498_v47  ;;  %v324_v47 = vsel %vm256_vm1, %v319_v7, %v323_v33 }
  0x50   : > { %578 = vrot.lane.b32.xlu0 %v292_v23, %s1321_s11 }
  0x51   : > { %586 = vrot.lane.b32.xlu1 %v553_v20, %s1321_s11 }
  0x54   : > { %580 = vrot.lane.b32.xlu0 %v1535_v1, %s1321_s11  ;;  %v316_v1 = vsel %vm256_vm1, %v311_v12, %v1647_v42  ;;  %v1050_v42 = vcombine.low %v1613_v57, %v1560_v30  ;;  %v470_v57 = vshll.u32 %v1051_v55, 16 }
  0x55   : > { %588 = vrot.lane.b32.xlu1 %v561_v45, %s1321_s11 }
  0x56   : > { %v462_v49 = vshll.u32 %v1050_v42, 16  ;;  %v466_v30 = vshrl.u32 %v1050_v42, 16  ;;  %v472_v32 = vrot.slane %v470_v57, 1 }
  0x58   : > { %602 = vrot.lane.b32.xlu0 %v350_v0, %s1322_s20 }
  0x59   : > { %610 = vrot.lane.b32.xlu1 %v595_v52, %s1322_s20 }
  0x5c   : > { %329 = vrot.lane.b32.xlu0 %v284_v21, %s1317_s27 }
  0x5d   : > { %337 = vrot.lane.b32.xlu1 %v316_v1, %s1317_s27 }
  0x60   : > { %604 = vrot.lane.b32.xlu0 %v1476_v31, %s1322_s20  ;;  %v458_v31 = vshrl.u32 %v1525_v60, 16 }
  0x61   : > { %612 = vrot.lane.b32.xlu1 %v597_v24, %s1322_s20 }
  0x62   : > { %v460_v40 = vor.u32 %v458_v31, %v1557_v29  ;;  %v503_v29 = vrot.slane %v1050_v42, 1 }
  0x64   : > { %331 = vrot.lane.b32.xlu0 %v292_v23, %s1317_s27 }
  0x65   : > { %339 = vrot.lane.b32.xlu1 %v324_v47, %s1317_s27  ;;  %s1323_s27 = smov [#allocation2]  }
  0x68   : > { %363 = vrot.lane.b32.xlu0 %v1595_v4, %s1316_s24  ;;  %v464_v4 = vrot.slane %v462_v49, 1 }
  0x69   : > { %371 = vrot.lane.b32.xlu1 %v1588_v50, %s1316_s24 }
  0x6a   : > { %v465_v5 = vsel %vm256_vm1, %v460_v40, %v464_v4  ;;  %v468_v62 = vor.u32 %v466_v30, %v464_v4 }
  0x6c   : > { %365 = vrot.lane.b32.xlu0 %v350_v0, %s1316_s24 }
  0x6d   : > { %373 = vrot.lane.b32.xlu1 %v358_v41, %s1316_s24 }
  0x70   : > { %391 = vrot.lane.b32.xlu0 %v1529_v61, %s1315_s21  ;;  %v473_v61 = vsel %vm256_vm1, %v468_v62, %v472_v32 }
  0x71   : > { %399 = vrot.lane.b32.xlu1 %v1525_v60, %s1315_s21 }
  0x74   : > { %393 = vrot.lane.b32.xlu0 %v1600_v10, %s1315_s21  ;;  %v504_v10 = vsel %vm341_vm0, %v501_v54, %v503_v29 }
  0x75   : > { %401 = vrot.lane.b32.xlu1 %v1050_v42, %s1315_s21  ;;  %s175_s21 = sand.u32 1, %s1289_s13  }
  0x78   : > { %478 = vrot.lane.b32.xlu0 %v1636_v22, %s1318_s28  ;;  %v506_v22 = vsel %vm341_vm0, %v503_v29, %v505_v6 }
  0x79   : > { %486 = vrot.lane.b32.xlu1 %v465_v5, %s1318_s28 }
  0x7c   : > { %480 = vrot.lane.b32.xlu0 %v1651_v44, %s1318_s28 }
  0x7d   : > { %488 = vrot.lane.b32.xlu1 %v473_v61, %s1318_s28  ;;  %s1225_s28 = sshll.u32 %s1323_s27, 4  ;;  %s1226_s28 = int_to_ptr.vmem [resolvable:$false] %s1225_s28 }
  0x80   : > { %511 = vrot.lane.b32.xlu0 %v1642_v36, %s1319_s29 }
  0x81   : > { %519 = vrot.lane.b32.xlu1 %v504_v10, %s1319_s29 }
  0x84   : > { %513 = vrot.lane.b32.xlu0 %v1645_v37, %s1319_s29 }
  0x85   : > { %521 = vrot.lane.b32.xlu1 %v506_v22, %s1319_s29  ;;  %s1030_s29 = sshll.u32 %s175_s21, 7 }
  0x86   : > { %s1886_s4 = scalar_lea.vmem [#allocation2], %s1030_s29  ;;  %s1227_s29 = scalar_lea.vmem %s1226_s28, 4096 }
  0x87   : > { %s947_s16 = sshll.u32 %s1886_s4, 4  ;;  %s1922_s16 = int_to_ptr.vmem [resolvable:$true] %s947_s16 }
  0x88   : > { %534 = vrot.lane.b32.xlu0 %v1437_v8, %s1320_s6  ;;  %p1228_p2 = scmp.lt.s32.totalorder %s1922_s16, %s1226_s28 }
  0x89   : > { %542 = vrot.lane.b32.xlu1 %v1569_v38, %s1320_s6 }
  0x8c   : > { %536 = vrot.lane.b32.xlu0 %v1427_v3, %s1320_s6 }
  0x8d   : > { %544 = vrot.lane.b32.xlu1 %v1609_v26, %s1320_s6  ;;  %s1069_s6 = sshll.u32 %s1297_s15, 4 }
  0x8e   : > { %s944_s7 = sadd.s32 %s1115_s5, %s1069_s6 }
  0x8f   : > { %s1070_s15 = sshll.u32 %s944_s7, 7 }
  0x90   : > { %582 = vrot.lane.b32.xlu0 %v1522_v59, %s1321_s11  ;;  %s1918_s10 = scalar_lea.hbm %s1983_s3, %s1070_s15 }
  0x91   : > { %590 = vrot.lane.b32.xlu1 %v1660_v56, %s1321_s11  ;;  %v396_v60 = vpop.permute.xlu1 %395 }
  0x92   : > { %v388_v54 = vpop.permute.xlu0 %387 }
  0x94   : > { %584 = vrot.lane.b32.xlu0 %v316_v1, %s1321_s11 }
  0x95   : > { %592 = vrot.lane.b32.xlu1 %v1678_v63, %s1321_s11  ;;  %s1928_s11 = scalar_lea.sflag [#allocation3], %s175_s21 }
  0x96   : > { %v360_v36 = vpop.permute.xlu0 %359 }
  0x97   : > { %v368_v38 = vpop.permute.xlu1 %367 }
  0x98   : > { %606 = vrot.lane.b32.xlu0 %v1489_v39, %s1322_s20 }
  0x99   : > { %614 = vrot.lane.b32.xlu1 %v1665_v15, %s1322_s20 }
  0x9a   : > { %v362_v37 = vpop.permute.xlu0 %361 }
  0x9b   : > { %v370_v26 = vpop.permute.xlu1 %369 }
  0x9c   : > { %608 = vrot.lane.b32.xlu0 %v1588_v50, %s1322_s20 }
  0x9d   : > { %616 = vrot.lane.b32.xlu1 %v1668_v58, %s1322_s20  ;;  %s1221_s20 = scalar_lea.vmem %s1922_s16, 2048 }
  0x9e   : > { %v326_v44 = vpop.permute.xlu0 %325  ;;  %p1222_p13 = scmp.ne.s32.totalorder %s1922_s16, %s1221_s20  ;;  %p1229_p4 = scmp.lt.s32.totalorder %s1227_s29, %s1221_s20 }
  0x9f   : > { %v328_v59 = vpop.permute.xlu1 %327  ;;  %v620_v50 = vsel %vm618_vm3, %v1460_v18, %v326_v44 }
  0xa0   : > { %v637_v0 = vsel %vm635_vm4, %v620_v50, %v360_v36  ;;  %v622_v51 = vsel %vm618_vm3, %v1448_v14, %v328_v59  ;;  %p1223_p0 = pnand %p1222_p13, %p1396_p3  ;;  %p1230_p5 = por %p1229_p4, %p1228_p2 }
  0xa1   : > { %v654_v43 = vsel %vm652_vm5, %v637_v0, %v388_v54  ;;  %v639_v14 = vsel %vm635_vm4, %v622_v51, %v362_v37 }
  0xa2   : > { %v334_v63 = vpop.permute.xlu0 %333  ;;  %p1224_p1 = pneg %p1223_p0 }
  0xa3   : > { %v336_v56 = vpop.permute.xlu1 %335  ;;  %v628_v48 = vsel %vm618_vm3, %v1456_v16, %v334_v63 }
  0xa4   : > { %v645_v12 = vsel %vm635_vm4, %v628_v48, %v368_v38  ;;  %v630_v41 = vsel %vm618_vm3, %v1437_v8, %v336_v56  ;;  %p1231_p6 = pnand %p1230_p5, %p1224_p1 }
  0xa5   : > { %v662_v53 = vsel %vm652_vm5, %v645_v12, %v396_v60  ;;  %v647_v30 = vsel %vm635_vm4, %v630_v41, %v370_v26 }
  0xa6   : > { %v390_v9 = vpop.permute.xlu0 %389 }
  0xa7   : > { %v398_v7 = vpop.permute.xlu1 %397  ;;  %v656_v57 = vsel %vm652_vm5, %v639_v14, %v390_v9 }
  0xa8   : > { %v664_v8 = vsel %vm652_vm5, %v647_v30, %v398_v7 }
  0xaa   : > { %v475_v17 = vpop.permute.xlu0 %474 }
  0xab   : > { %v483_v11 = vpop.permute.xlu1 %482  ;;  %v671_v16 = vsel %vm669_vm6, %v654_v43, %v475_v17 }
  0xac   : > { %v679_v18 = vsel %vm669_vm6, %v662_v53, %v483_v11 }
  0xae   : > { %v477_v19 = vpop.permute.xlu0 %476 }
  0xaf   : > { %v485_v15 = vpop.permute.xlu1 %484  ;;  %v673_v61 = vsel %vm669_vm6, %v656_v57, %v477_v19 }
  0xb0   : > { %v681_v32 = vsel %vm669_vm6, %v664_v8, %v485_v15 }
  0xb2   : > { %v508_v39 = vpop.permute.xlu0 %507 }
  0xb3   : > { %v516_v20 = vpop.permute.xlu1 %515  ;;  %v688_v24 = vsel %vm686_vm7, %v671_v16, %v508_v39 }
  0xb4   : > { %v696_v2 = vsel %vm686_vm7, %v679_v18, %v516_v20 }
  0xb6   : > { %v510_v28 = vpop.permute.xlu0 %509 }
  0xb7   : > { %v518_v23 = vpop.permute.xlu1 %517  ;;  %v690_v10 = vsel %vm686_vm7, %v673_v61, %v510_v28 }
  0xb8   : > { %v698_v29 = vsel %vm686_vm7, %v681_v32, %v518_v23 }
  0xba   : > { %v531_v35 = vpop.permute.xlu0 %530 }
  0xbb   : > { %v539_v34 = vpop.permute.xlu1 %538  ;;  %v705_v47 = vsel %vm703_vm8, %v688_v24, %v531_v35 }
  0xbc   : > { %v713_v33 = vsel %vm703_vm8, %v696_v2, %v539_v34 }
  0xbe   : > { %v533_v45 = vpop.permute.xlu0 %532 }
  0xbf   : > { %v541_v58 = vpop.permute.xlu1 %540  ;;  %v707_v22 = vsel %vm703_vm8, %v690_v10, %v533_v45 }
  0xc0   : > { %v715_v6 = vsel %vm703_vm8, %v698_v29, %v541_v58 }
  0xc2   : > { %v579_v52 = vpop.permute.xlu0 %578 }
  0xc3   : > { %v587_v46 = vpop.permute.xlu1 %586  ;;  %v722_v31 = vsel %vm720_vm9, %v705_v47, %v579_v52 }
  0xc4   : > { %v730_v42 = vsel %vm720_vm9, %v713_v33, %v587_v46 }
  0xc6   : > { %v581_v21 = vpop.permute.xlu0 %580 }
  0xc7   : > { %v589_v1 = vpop.permute.xlu1 %588  ;;  %v724_v54 = vsel %vm720_vm9, %v707_v22, %v581_v21 }
  0xc8   : > { %v732_v60 = vsel %vm720_vm9, %v715_v6, %v589_v1 }
  0xca   : > { %v603_v55 = vpop.permute.xlu0 %602 }
  0xcb   : > { %v611_v49 = vpop.permute.xlu1 %610  ;;  %v739_v40 = vsel %vm737_vm10, %v722_v31, %v603_v55 }
  0xcc   : > { %v747_v4 = vsel %vm737_vm10, %v730_v42, %v611_v49  ;;  %1090 = vmatprep.mubr.msk.bf16.mxu0 %vm781_vm11, %v739_v40 }
  0xcd   : > { %1098 = vmatprep.mubr.msk.bf16.mxu1 %vm781_vm11, %v747_v4 }
  0xce   : > { %v330_v62 = vpop.permute.xlu0 %329 }
  0xcf   : > { %v338_v5 = vpop.permute.xlu1 %337  ;;  %v624_v63 = vsel %vm618_vm3, %v1446_v13, %v330_v62 }
  0xd0   : > { %v632_v56 = vsel %vm618_vm3, %v1427_v3, %v338_v5 }
  0xd2   : > { %v605_v36 = vpop.permute.xlu0 %604 }
  0xd3   : > { %v613_v38 = vpop.permute.xlu1 %612  ;;  %v741_v37 = vsel %vm737_vm10, %v724_v54, %v605_v36 }
  0xd4   : > { %v749_v26 = vsel %vm737_vm10, %v732_v60, %v613_v38  ;;  %1091 = vmatmul.mubr.msk.bf16.vlgmr.msra.gmra.mxu0 %vm781_vm11, %v741_v37 }
  0xd5   : > { %1099 = vmatmul.mubr.msk.bf16.vlgmr.msra.gmra.mxu1 %vm781_vm11, %v749_v26  ;;  %v1878_v26 = vld [vmem:[%s1982_s2] ss:$0 sm:$0xff] }
  0xd6   : > { %v332_v44 = vpop.permute.xlu0 %331 }
  0xd7   : > { %v340_v59 = vpop.permute.xlu1 %339  ;;  %v626_v19 = vsel %vm618_vm3, %v1553_v27, %v332_v44 }
  0xd8   : > { %v634_v15 = vsel %vm618_vm3, %v1549_v25, %v340_v59 }
  0xda   : > { %v364_v9 = vpop.permute.xlu0 %363 }
  0xdb   : > { %v372_v7 = vpop.permute.xlu1 %371  ;;  %v641_v17 = vsel %vm635_vm4, %v624_v63, %v364_v9 }
  0xdc   : > { %v649_v11 = vsel %vm635_vm4, %v632_v56, %v372_v7 }
  0xde   : > { %v366_v39 = vpop.permute.xlu0 %365 }
  0xdf   : > { %v374_v20 = vpop.permute.xlu1 %373  ;;  %v643_v3 = vsel %vm635_vm4, %v626_v19, %v366_v39 }
  0xe0   : > { %v651_v23 = vsel %vm635_vm4, %v634_v15, %v374_v20 }
  0xe2   : > { %v392_v13 = vpop.permute.xlu0 %391 }
  0xe3   : > { %v400_v28 = vpop.permute.xlu1 %399  ;;  %v658_v16 = vsel %vm652_vm5, %v641_v17, %v392_v13 }
  0xe4   : > { %v666_v18 = vsel %vm652_vm5, %v649_v11, %v400_v28 }
  0xe6   : > { %v394_v35 = vpop.permute.xlu0 %393 }
  0xe7   : > { %v402_v34 = vpop.permute.xlu1 %401  ;;  %v660_v55 = vsel %vm652_vm5, %v643_v3, %v394_v35 }
  0xe8   : > { %v668_v49 = vsel %vm652_vm5, %v651_v23, %v402_v34 }
  0xea   : > { %v479_v45 = vpop.permute.xlu0 %478 }
  0xeb   : > { %v487_v58 = vpop.permute.xlu1 %486  ;;  %v675_v47 = vsel %vm669_vm6, %v658_v16, %v479_v45 }
  0xec   : > { %v683_v33 = vsel %vm669_vm6, %v666_v18, %v487_v58 }
  0xee   : > { %v481_v48 = vpop.permute.xlu0 %480 }
  0xef   : > { %v489_v50 = vpop.permute.xlu1 %488  ;;  %v677_v57 = vsel %vm669_vm6, %v660_v55, %v481_v48 }
  0xf0   : > { %v685_v8 = vsel %vm669_vm6, %v668_v49, %v489_v50 }
  0xf2   : > { %v512_v52 = vpop.permute.xlu0 %511 }
  0xf3   : > { %v520_v46 = vpop.permute.xlu1 %519  ;;  %v692_v41 = vsel %vm686_vm7, %v675_v47, %v512_v52 }
  0xf4   : > { %v700_v51 = vsel %vm686_vm7, %v683_v33, %v520_v46 }
  0xf6   : > { %v514_v0 = vpop.permute.xlu0 %513 }
  0xf7   : > { %v522_v25 = vpop.permute.xlu1 %521  ;;  %v694_v61 = vsel %vm686_vm7, %v677_v57, %v514_v0 }
  0xf8   : > { %v702_v32 = vsel %vm686_vm7, %v685_v8, %v522_v25 }
  0xfa   : > { %v535_v27 = vpop.permute.xlu0 %534 }
  0xfb   : > { %v543_v12 = vpop.permute.xlu1 %542  ;;  %v709_v31 = vsel %vm703_vm8, %v692_v41, %v535_v27 }
  0xfc   : > { %v717_v42 = vsel %vm703_vm8, %v700_v51, %v543_v12 }
  0xfe   : > { %v537_v43 = vpop.permute.xlu0 %536 }
  0xff   : > { %v545_v53 = vpop.permute.xlu1 %544  ;;  %v711_v10 = vsel %vm703_vm8, %v694_v61, %v537_v43 }
 0x100   : > { %v719_v29 = vsel %vm703_vm8, %v702_v32, %v545_v53 }
 0x102   : > { %v583_v21 = vpop.permute.xlu0 %582 }
 0x103   : > { %v591_v1 = vpop.permute.xlu1 %590  ;;  %v726_v4 = vsel %vm720_vm9, %v709_v31, %v583_v21 }
 0x104   : > { %v734_v40 = vsel %vm720_vm9, %v717_v42, %v591_v1 }
 0x106   : > { %v585_v24 = vpop.permute.xlu0 %584 }
 0x107   : > { %v593_v2 = vpop.permute.xlu1 %592  ;;  %v728_v22 = vsel %vm720_vm9, %v711_v10, %v585_v24 }
 0x108   : > { %v736_v6 = vsel %vm720_vm9, %v719_v29, %v593_v2 }
 0x10a   : > { %v607_v14 = vpop.permute.xlu0 %606 }
 0x10b   : > { %v615_v30 = vpop.permute.xlu1 %614  ;;  %v743_v62 = vsel %vm737_vm10, %v726_v4, %v607_v14 }
 0x10c   : > { %v751_v5 = vsel %vm737_vm10, %v734_v40, %v615_v30  ;;  %1094 = vmatprep.mubr.msk.bf16.mxu0 %vm781_vm11, %v743_v62 }
 0x10d   : > { %1102 = vmatprep.mubr.msk.bf16.mxu1 %vm781_vm11, %v751_v5 }
 0x10e   : > { %v609_v54 = vpop.permute.xlu0 %608 }
 0x10f   : > { %v617_v60 = vpop.permute.xlu1 %616  ;;  %v745_v36 = vsel %vm737_vm10, %v728_v22, %v609_v54 }
 0x110   : > { %v753_v38 = vsel %vm737_vm10, %v736_v6, %v617_v60  ;;  %1095 = vmatmul.mubr.msk.bf16.gmra.mxu0 %vm781_vm11, %v745_v36 }
 0x111   : > { %1103 = vmatmul.mubr.msk.bf16.gmra.mxu1 %vm781_vm11, %v753_v38 }
 0x194   : > { %v1092_v37 = vpop.f32.mrf.mxu0 }
 0x195   : > { %v1100_v59 = vpop.f32.mrf.mxu1  ;;  %v845_v44 = vadd.f32 %v1092_v37, %v1878_v26 }
 0x196   : > { %v877_v56 = vadd.f32 %v1100_v59, %v1878_v26  ;;  %v836_v63 = vpop.f32.mrf.mxu0 }
 0x197   : > { %v868_v7 = vpop.f32.mrf.mxu1  ;;  %v901_v9 = vmax.f32 %v845_v44, 0.0  ;;  %v837_v17 = vadd.f32 %v1878_v26, %v836_v63 }
 0x198   : > { %v909_v11 = vmax.f32 %v877_v56, 0.0  ;;  %v869_v15 = vadd.f32 %v1878_v26, %v868_v7  ;;  %v1093_v19 = vpop.f32.mrf.mxu0 }
 0x199   : > { %v1101_v20 = vpop.f32.mrf.mxu1  ;;  %917 = vst [vmem:[%s1886_s4 + $0x10] sm:$0xff] %v901_v9  ;;  %v899_v39 = vmax.f32 %v837_v17, 0.0  ;;  %v848_v3 = vadd.f32 %v1093_v19, %v1878_v26 }
 0x19a   : > { %925 = vst [vmem:[%s1886_s4 + $0x50] sm:$0xff] %v909_v11  ;;  %v907_v23 = vmax.f32 %v869_v15, 0.0  ;;  %v880_v28 = vadd.f32 %v1101_v20, %v1878_v26  ;;  %v839_v13 = vpop.f32.mrf.mxu0 }
 0x19b   : > { %v871_v34 = vpop.f32.mrf.mxu1  ;;  %915 = vst [vmem:[%s1886_s4] sm:$0xff] %v899_v39  ;;  %v902_v35 = vmax.f32 %v848_v3, 0.0  ;;  %v840_v45 = vadd.f32 %v1878_v26, %v839_v13 }
 0x19c   : > { %923 = vst [vmem:[%s1886_s4 + $0x40] sm:$0xff] %v907_v23  ;;  %v910_v58 = vmax.f32 %v880_v28, 0.0  ;;  %v872_v50 = vadd.f32 %v1878_v26, %v871_v34 }
 0x19d   : > { %918 = vst [vmem:[%s1886_s4 + $0x18] sm:$0xff] %v902_v35  ;;  %v900_v48 = vmax.f32 %v840_v45, 0.0 }
 0x19e   : > { %926 = vst [vmem:[%s1886_s4 + $0x58] sm:$0xff] %v910_v58  ;;  %v908_v46 = vmax.f32 %v872_v50, 0.0 }
 0x19f   : > { %916 = vst [vmem:[%s1886_s4 + $0x8] sm:$0xff] %v900_v48 }
 0x1a0   : > { %924 = vst [vmem:[%s1886_s4 + $0x48] sm:$0xff] %v908_v46 }
 0x1d0   : > { %v1096_v52 = vpop.f32.mrf.mxu0 }
 0x1d1   : > { %v1104_v25 = vpop.f32.mrf.mxu1  ;;  %v861_v0 = vadd.f32 %v1096_v52, %v1878_v26 }
 0x1d2   : > { %v893_v12 = vadd.f32 %v1104_v25, %v1878_v26  ;;  %v852_v27 = vpop.f32.mrf.mxu0 }
 0x1d3   : > { %v884_v53 = vpop.f32.mrf.mxu1  ;;  %v905_v43 = vmax.f32 %v861_v0, 0.0  ;;  %v853_v21 = vadd.f32 %v1878_v26, %v852_v27 }
 0x1d4   : > { %v913_v1 = vmax.f32 %v893_v12, 0.0  ;;  %v885_v18 = vadd.f32 %v1878_v26, %v884_v53  ;;  %v1097_v16 = vpop.f32.mrf.mxu0 }
 0x1d5   : > { %v1105_v2 = vpop.f32.mrf.mxu1  ;;  %921 = vst [vmem:[%s1886_s4 + $0x30] sm:$0xff] %v905_v43  ;;  %v903_v24 = vmax.f32 %v853_v21, 0.0  ;;  %v864_v47 = vadd.f32 %v1097_v16, %v1878_v26 }
 0x1d6   : > { %929 = vst [vmem:[%s1886_s4 + $0x70] sm:$0xff] %v913_v1  ;;  %v911_v33 = vmax.f32 %v885_v18, 0.0  ;;  %v896_v51 = vadd.f32 %v1105_v2, %v1878_v26  ;;  %v855_v41 = vpop.f32.mrf.mxu0 }
 0x1d7   : > { %v887_v42 = vpop.f32.mrf.mxu1  ;;  %919 = vst [vmem:[%s1886_s4 + $0x20] sm:$0xff] %v903_v24  ;;  %v906_v31 = vmax.f32 %v864_v47, 0.0  ;;  %v856_v55 = vadd.f32 %v1878_v26, %v855_v41 }
 0x1d8   : > { %927 = vst [vmem:[%s1886_s4 + $0x60] sm:$0xff] %v911_v33  ;;  %v914_v49 = vmax.f32 %v896_v51, 0.0  ;;  %v888_v40 = vadd.f32 %v1878_v26, %v887_v42 }
 0x1d9   : > { %922 = vst [vmem:[%s1886_s4 + $0x38] sm:$0xff] %v906_v31  ;;  %v904_v4 = vmax.f32 %v856_v55, 0.0 }
 0x1da   : > { %930 = vst [vmem:[%s1886_s4 + $0x78] sm:$0xff] %v914_v49  ;;  %v912_v30 = vmax.f32 %v888_v40, 0.0 }
 0x1db   : > { %920 = vst [vmem:[%s1886_s4 + $0x28] sm:$0xff] %v904_v4 }
 0x1dc   : > { %928 = vst [vmem:[%s1886_s4 + $0x68] sm:$0xff] %v912_v30 }
 0x1dd   : > { %1234 = shalt.err (!%p1231_p6)
}
 0x1de   : > { %s1235_s21 = scalar_lea.hbm %s1918_s10, 2048  ;;  %s1239_s6 = scalar_lea.hbm %s1983_s3, 12288 }
 0x1df   : > { %p1236_p7 = scmp.ne.s32.totalorder %s1918_s10, %s1235_s21  ;;  %p1240_p11 = scmp.lt.s32.totalorder %s1918_s10, %s1983_s3 }
 0x1e0   : > { %p1241_p12 = scmp.lt.s32.totalorder %s1239_s6, %s1235_s21 }
 0x1e1   : > { %p1237_p9 = pnand %p1236_p7, %p1396_p3 }
 0x1e2   : > { %p1242_p13 = por %p1241_p12, %p1240_p11 }
 0x1e3   : > { %p1238_p10 = pneg %p1237_p9 }
 0x1e5   : > { %p1243_p0 = pnand %p1242_p13, %p1238_p10 }
 0x1e7   : > { %1246 = shalt.err (!%p1243_p0)
}
 0x1e8   : > { %s1324_s8 = smov 128  }
 0x1e9   : > { %1116 = dma.vmem_to_hbm [thread:$0]  (%p1396_p3), %s1922_s16, 2048, %s1918_s10, %s1928_s11, %s1324_s8, %s1324_s8, %s1316_s24  }
 0x1ea PF: > { %p1122_p1 = scmp.ge.s32.totalorder %s1313_s19, 2  ;;  %s962_s9 = sand.u32 1, %s1285_s12  }
 0x1eb   : > { %s963_s20 = scalar_lea.sflag [#allocation3], %s962_s9 }
 0x1ec   : > { %p1119_p2 = pnand %p1122_p1, %p1405_p8 }
 0x1ee   : > { %p1120_p4 = pneg %p1119_p2 }
 0x1f0   : > { %1280 = dma.done.wait (%p1120_p4), %s963_s20, 2048  }
 0x1f1   : > { %1282 = vsyncadd (%p1120_p4), %s963_s20, 4294965248  ;;  %s16_s19 = sadd.s32 1, %s1313_s19   ;;  %s1986_s12 = smov %s1289_s13 }
 0x1f2   : > { %p13_p5 = scmp.ge.s32.totalorder %s16_s19, 8   ;;  %s1987_s13 = smov %s1293_s14 }
 0x1f3   : > { %s1988_s14 = smov %s1414_s30  ;;  %s1989_s15 = smov %s1305_s17 }
 0x1f4   : > { %s1990_s16 = smov %s1309_s18  ;;  %s1991_s17 = smov %s1994_s22 }
 0x1f5   : > { %s1992_s18 = smov %s1998_s23  ;;  %15 = sbr.rel (!%p13_p5) target bundleno = 5 (0x5), region = 68 }
 0x1fa   :  { %968 = vsyncpa [#allocation3], 1 }
 0x1fb   :  { %970 = vsyncpa [#allocation3 + $0x1], 1 }

// kernel: tpu_custom_call.1
= control target key start
LH: loop header
LB: loop body
LE: loop exit
PB: predicated region body
PF: predicated region fallthrough
CT: control target
= control target key end

     0   :  { %8 = vsyncpa [#allocation3], 0  ;;  %s1980_s0 = inlined_call_operand.vmem [shape: bf16[2,456,4], index: 0, kind: input, shape index: {}]   ;;  %s1981_s1 = inlined_call_operand.vmem [shape: bf16[36,128], index: 1, kind: input, shape index: {}]   ;;  %s1982_s2 = inlined_call_operand.vmem [shape: f32[1,128], index: 2, kind: input, shape index: {}]   ;;  %s1983_s3 = inlined_call_operand.hbm [shape: f32[2,384,128], index: 3, kind: output, shape index: {}]  }
   0x1   :  { %10 = vsyncpa [#allocation3 + $0x1], 0  ;;  %s1345_s12 = smov 0   ;;  %s1347_s13 = smov 0  }
   0x2   :  { %s1349_s14 = smov 0   ;;  %s1351_s15 = smov 0  }
   0x3   :  { %s1353_s16 = smov 0   ;;  %s1355_s17 = smov 0  }
   0x4   :  { %s1357_s18 = smov 0   ;;  %s1359_s19 = smov 0  }
   0x5 LB: > { %s1025_s20 = sadd.s32 4294967295, %s1313_s19   ;;  %s1026_s21 = sadd.s32 4294967294, %s1313_s19   ;;  %s1313_s19 = sphi %s1359_s19, %s16_s19   ;;  %s1309_s18 = sphi %s1357_s18, %s1992_s18   ;;  %s1305_s17 = sphi %s1355_s17, %s1991_s17   ;;  %s1301_s16 = sphi %s1353_s16, %s1990_s16   ;;  %s1297_s15 = sphi %s1351_s15, %s1989_s15   ;;  %s1293_s14 = sphi %s1349_s14, %s1988_s14   ;;  %s1289_s13 = sphi %s1347_s13, %s1987_s13   ;;  %s1285_s12 = sphi %s1345_s12, %s1986_s12  }
   0x6   : > { %s25_s22 = sadd.s32 1, %s1305_s17  ;;  %s28_s23 = sadd.s32 1, %s1309_s18 }
   0x7   : > { %p26_p0 = scmp.ge.s32.totalorder %s25_s22, 3  ;;  %p115_p1 = scmp.ne.s32.totalorder %s1293_s14, %s1289_s13 }
   0x8   : > { %p116_p2 = scmp.eq.s32.totalorder %s1025_s20, 5  ;;  %p121_p5 = scmp.ne.s32.totalorder %s1289_s13, %s1285_s12 }
   0x9   : > { %s1994_s22 = smov (%p26_p0, %s25_s22), 0  ;;  %s1996_s23 = smov (!%p26_p0, %s28_s23), %s1309_s18 }
   0xa   : > { %s101_s24 = ssub.s32 %s1305_s17, %s1994_s22  ;;  %p1396_p3 = por %p116_p2, %p115_p1 }
   0xb   : > { %p30_p4 = scmp.ge.s32.totalorder %s1996_s23, 2  ;;  %p122_p6 = scmp.eq.s32.totalorder %s1026_s21, 5 }
   0xc   : > { %p1029_p7 = scmp.ge.s32.totalorder %s1313_s19, 1  ;;  %p154_p9 = scmp.lt.s32.totalorder %s1313_s19, 7 }
   0xd   : > { %s1998_s23 = smov (%p30_p4, %s1996_s23), 0  ;;  %p1405_p8 = por %p122_p6, %p121_p5 }
   0xe   : > { %s100_s27 = ssub.s32 %s1309_s18, %s1998_s23  ;;  %s105_s28 = sadd.s32 1, %s1293_s14 }
   0xf   : > { %s102_s29 = sor.u32 %s101_s24, %s100_s27  ;;  %p155_p10 = pnand %p1029_p7, %p154_p9 }
  0x10   : > { %p103_p11 = scmp.eq.s32.totalorder %s102_s29, 0  ;;  %p178_p12 = scmp.lt.s32.totalorder (!%p155_p10), %s1301_s16, 1 }
  0x11   : > { %158 = sbr.rel (%p155_p10) target bundleno = 490 (0x1ea), region = 32  ;;  %s1032_s4 = sshll.u32 (!%p155_p10), %s1297_s15, 7 }
  0x12   : > { %s1414_s30 = scalar_select %p103_p11, %s1293_s14, %s105_s28  }
  0x13   : > { %s186_s5 = sshra.s32 (!%p155_p10), %s1032_s4, 3  ;;  %s1315_s21 = smov (!%p155_p10), 12  }
  0x14   : > { %s1033_s8 = sshll.u32 (!%p155_p10), %s186_s5, 2  ;;  %s1316_s24 = smov (!%p155_p10), 8  }
  0x15   : > { %s1317_s27 = smov (!%p155_p10), 4   ;;  %s1318_s28 = smov (!%p155_p10), 16  }
  0x16   : > { %s179_s6 = scalar_select %p178_p12, %s1301_s16, 1  ;;  %vm341_vm0 = vcmask 1046528   ;;  %vm256_vm1 = vsmask.f32 7424  ;;  %vm798_vm2 = vcmask 1041408   ;;  %vm618_vm3 = vcmask 31744  }
  0x17   : > { %s1319_s29 = smov 20   ;;  %vm635_vm4 = vcmask 64512   ;;  %vm652_vm5 = vcmask 97280   ;;  %vm669_vm6 = vcmask 130048   ;;  %vm686_vm7 = vcmask 162816   ;;  %s1115_s5 = smul.u32 48, %s1301_s16 }
  0x18   : > { %s1114_s7 = smul.u32 228, %s179_s6  ;;  %s1320_s6 = smov 24   ;;  %vm703_vm8 = vcmask 195584   ;;  %vm720_vm9 = vcmask 228352   ;;  %vm737_vm10 = vcmask 261120   ;;  %vm781_vm11 = vcmask 293888  }
  0x1a   : > { %s182_s11 = scalar_lea.vmem %s1980_s0, %s1114_s7 }
  0x1b   : > { %s1422_s20 = scalar_lea.vmem %s182_s11, %s1033_s8  ;;  %s1321_s11 = smov 28  }
  0x1c   : > { %v201_v0 = vld [vmem:[%s1422_s20 + $0x2c] sm:$0xf]  ;;  %v202_v1 = vld [vmem:[%s1422_s20 + $0x30] sm:$0xf]  ;;  %v203_v2 = vld [vmem:[%s1422_s20 + $0x34] sm:$0xf] }
  0x1d   : > { %v1427_v3 = vcombine.low %v202_v1, %v203_v2  ;;  %v1429_v4 = vcombine.low %v201_v0, %v202_v1  ;;  %v1432_v5 = vld [vmem:[%s1422_s20 + $0x28] sm:$0xf]  ;;  %v193_v6 = vld [vmem:[%s1422_s20 + $0xc] sm:$0xf]  ;;  %v194_v7 = vld [vmem:[%s1422_s20 + $0x10] sm:$0xf] }
  0x1e   : > { %v1437_v8 = vcombine.low %v1432_v5, %v201_v0  ;;  %v195_v9 = vld [vmem:[%s1422_s20 + $0x14] sm:$0xf]  ;;  %v1440_v10 = vcombine.low %v193_v6, %v194_v7  ;;  %v192_v11 = vld [vmem:[%s1422_s20 + $0x8] sm:$0xf]  ;;  %v198_v12 = vld [vmem:[%s1422_s20 + $0x20] sm:$0xf] }
  0x1f   : > { %395 = vrot.lane.b32.xlu1 %v1429_v4, %s1315_s21  ;;  %v1446_v13 = vcombine.low %v194_v7, %v195_v9  ;;  %v1448_v14 = vcombine.low %v192_v11, %v193_v6  ;;  %v1451_v15 = vld [vmem:[%s1422_s20 + $0x24] sm:$0xf]  ;;  %v353_v21 = vrot.slane %v1427_v3, 1  ;;  %v305_v38 = vshll.u32 %v1427_v3, 16  ;;  %v204_v43 = vld [vmem:[%s1422_s20 + $0x38] sm:$0xf] }
  0x20   : > { %387 = vrot.lane.b32.xlu0 %v1440_v10, %s1315_s21  ;;  %v1456_v16 = vcombine.low %v198_v12, %v1451_v15  ;;  %v351_v17 = vrot.slane %v1437_v8, 1  ;;  %v1460_v18 = vld [vmem:[%s1422_s20] sm:$0xff]   ;;  %v297_v19 = vshll.u32 %v1437_v8, 16  ;;  %v301_v37 = vshrl.u32 %v1437_v8, 16  ;;  %v196_v45 = vld [vmem:[%s1422_s20 + $0x18] sm:$0xf] }
  0x21   : > { %v343_v20 = vrot.slane %v1448_v14, 1  ;;  %v265_v22 = vshll.u32 %v1448_v14, 16  ;;  %v269_v23 = vshrl.u32 %v1448_v14, 16  ;;  %v342_v25 = vrot.slane %v1460_v18, 1  ;;  %v205_v50 = vld [vmem:[%s1422_s20 + $0x3c] sm:$0xf] }
  0x22   : > { %v349_v24 = vrot.slane %v1456_v16, 1  ;;  %v345_v26 = vrot.slane %v1446_v13, 1  ;;  %v273_v27 = vshll.u32 %v1446_v13, 16  ;;  %v258_v29 = vshrl.u32 %v1460_v18, 16  ;;  %v1509_v51 = vld [vmem:[%s1422_s20 + $0x40] sm:$0xf] }
  0x23   : > { %v267_v28 = vrot.slane %v265_v22, 1  ;;  %v260_v30 = vshll.u32 %v1460_v18, 16  ;;  %v344_v32 = vsel %vm341_vm0, %v342_v25, %v343_v20  ;;  %v299_v34 = vrot.slane %v297_v19, 1  ;;  %v197_v55 = vld [vmem:[%s1422_s20 + $0x1c] sm:$0xf] }
  0x24   : > { %v1476_v31 = vsel %vm341_vm0, %v349_v24, %v351_v17  ;;  %v1479_v33 = vrot.slane %v273_v27, 1  ;;  %359 = vrot.lane.b32.xlu0 %v344_v32, %s1316_s24  ;;  %v1489_v39 = vsel %vm341_vm0, %v351_v17, %v353_v21  ;;  %v346_v40 = vsel %vm341_vm0, %v343_v20, %v345_v26  ;;  %v1563_v32 = vld [vmem:[%s1422_s20 + $0x4c] sm:$0xf] }
  0x25   : > { %367 = vrot.lane.b32.xlu1 %v1476_v31, %s1316_s24  ;;  %v271_v35 = vor.u32 %v269_v23, %v267_v28  ;;  %v262_v36 = vrot.slane %v260_v30, 1  ;;  %v289_v41 = vshll.u32 %v1456_v16, 16  ;;  %v293_v42 = vshrl.u32 %v1456_v16, 16  ;;  %v1560_v30 = vld [vmem:[%s1422_s20 + $0x48] sm:$0xf] }
  0x26   : > { %v303_v46 = vor.u32 %v301_v37, %v299_v34  ;;  %v1498_v47 = vrot.slane %v305_v38, 1  ;;  %v1511_v52 = vcombine.low %v203_v2, %v204_v43  ;;  %v1516_v56 = vcombine.low %v195_v9, %v196_v45 }
  0x27   : > { %v263_v44 = vor.u32 %v262_v36, %v258_v29  ;;  %v1500_v48 = vrot.slane %v289_v41, 1  ;;  %v276_v49 = vsel %vm256_vm1, %v271_v35, %v1479_v33  ;;  %v438_v57 = vshll.u32 %v1429_v4, 16 }
  0x28   : > { %361 = vrot.lane.b32.xlu0 %v346_v40, %s1316_s24  ;;  %v409_v58 = vshll.u32 %v1440_v10, 16  ;;  %v1522_v59 = vsel %vm256_vm1, %v303_v46, %v1498_v47  ;;  %v1525_v60 = vcombine.low %v205_v50, %v1509_v51  ;;  %v1529_v61 = vcombine.low %v197_v55, %v198_v12 }
  0x29   : > { %369 = vrot.lane.b32.xlu1 %v1489_v39, %s1316_s24  ;;  %v268_v53 = vsel %vm256_vm1, %v263_v44, %v267_v28  ;;  %v295_v54 = vor.u32 %v293_v42, %v1500_v48  ;;  %v442_v62 = vshrl.u32 %v1429_v4, 16  ;;  %v446_v63 = vshll.u32 %v1511_v52, 16 }
  0x2a   : > { %v407_v0 = vshrl.u32 %v1440_v10, 16  ;;  %v1537_v2 = vrot.slane %v438_v57, 1  ;;  %v411_v6 = vrot.slane %v409_v58, 1  ;;  %v414_v7 = vshll.u32 %v1516_v56, 16  ;;  %v1613_v57 = vld [vmem:[%s1422_s20 + $0x44] sm:$0xf] }
  0x2b   : > { %v1535_v1 = vsel %vm256_vm1, %v295_v54, %v299_v34  ;;  %v448_v9 = vrot.slane %v446_v63, 1  ;;  %v450_v11 = vshrl.u32 %v1511_v52, 16  ;;  %v454_v12 = vshll.u32 %v1525_v60, 16 }
  0x2c   : > { %325 = vrot.lane.b32.xlu0 %v268_v53, %s1317_s27  ;;  %v418_v17 = vshrl.u32 %v1516_v56, 16  ;;  %v444_v19 = vor.u32 %v442_v62, %v1537_v2  ;;  %v412_v20 = vor.u32 %v411_v6, %v407_v0  ;;  %v416_v22 = vrot.slane %v414_v7, 1 }
  0x2d   : > { %327 = vrot.lane.b32.xlu1 %v276_v49, %s1317_s27  ;;  %v422_v23 = vshll.u32 %v1529_v61, 16  ;;  %v1549_v25 = vcombine.low %v204_v43, %v205_v50  ;;  %v1553_v27 = vcombine.low %v196_v45, %v197_v55  ;;  %v452_v28 = vor.u32 %v450_v11, %v448_v9 }
  0x2e   : > { %v1557_v29 = vrot.slane %v454_v12, 1  ;;  %v449_v34 = vsel %vm256_vm1, %v444_v19, %v448_v9  ;;  %v417_v35 = vsel %vm256_vm1, %v412_v20, %v416_v22  ;;  %v420_v36 = vor.u32 %v418_v17, %v416_v22  ;;  %v1217_v19 = vld [vmem:[%s1422_s20 + $0x58] ss:$0 sps:$4 sm:$0xff]  }
  0x2f   : > { %v424_v37 = vrot.slane %v422_v23, 1  ;;  %v1569_v38 = vcombine.low %v1560_v30, %v1563_v32  ;;  %v1572_v40 = vrot.slane %v1549_v25, 1  ;;  %v347_v41 = vrot.slane %v1553_v27, 1 }
  0x30   : > { %333 = vrot.lane.b32.xlu0 %v1535_v1, %s1317_s27  ;;  %v457_v42 = vsel %vm256_vm1, %v452_v28, %v1557_v29  ;;  %v497_v43 = vrot.slane %v1429_v4, 1  ;;  %v499_v44 = vrot.slane %v1511_v52, 1  ;;  %v490_v45 = vrot.slane %v1440_v10, 1 }
  0x31   : > { %335 = vrot.lane.b32.xlu1 %v1522_v59, %s1317_s27  ;;  %v425_v46 = vsel %vm256_vm1, %v420_v36, %v424_v37  ;;  %v491_v49 = vrot.slane %v1516_v56, 1  ;;  %v1588_v50 = vsel %vm341_vm0, %v353_v21, %v1572_v40  ;;  %v1595_v4 = vsel %vm341_vm0, %v345_v26, %v347_v41  ;;  %v1609_v26 = vld [vmem:[%s1422_s20 + $0x50] sm:$0xff]   ;;  %s1322_s20 = smov 32  }
  0x32   : > { %v1600_v10 = vcombine.low %v1451_v15, %v1432_v5  ;;  %v426_v53 = vshrl.u32 %v1529_v61, 16  ;;  %v500_v21 = vsel %vm341_vm0, %v497_v43, %v499_v44  ;;  %v501_v54 = vrot.slane %v1525_v60, 1 }
  0x33   : > { %v493_v55 = vrot.slane %v1529_v61, 1  ;;  %v562_v58 = vshrl.u32 %v1569_v38, 16  ;;  %v313_v63 = vshll.u32 %v1549_v25, 16  ;;  %v1630_v12 = vcombine.low %v1509_v51, %v1613_v57 }
  0x34   : > { %389 = vrot.lane.b32.xlu0 %v1516_v56, %s1315_s21  ;;  %v492_v56 = vsel %vm341_vm0, %v490_v45, %v491_v49  ;;  %v428_v5 = vor.u32 %v426_v53, %v424_v37  ;;  %v430_v15 = vshll.u32 %v1600_v10, 16  ;;  %v434_v62 = vshrl.u32 %v1600_v10, 16 }
  0x35   : > { %397 = vrot.lane.b32.xlu1 %v1511_v52, %s1315_s21  ;;  %v558_v52 = vshll.u32 %v1569_v38, 16  ;;  %v495_v7 = vrot.slane %v1600_v10, 1  ;;  %v502_v9 = vsel %vm341_vm0, %v499_v44, %v501_v54  ;;  %v494_v11 = vsel %vm341_vm0, %v491_v49, %v493_v55 }
  0x36   : > { %v432_v6 = vrot.slane %v430_v15, 1  ;;  %v566_v17 = vshll.u32 %v1609_v26, 16  ;;  %v281_v20 = vshll.u32 %v1553_v27, 16  ;;  %v596_v49 = vrot.slane %v1569_v38, 1 }
  0x37   : > { %v1619_v0 = vrot.slane %v558_v52, 1  ;;  %v1642_v36 = vsel %vm341_vm0, %v493_v55, %v495_v7  ;;  %v1645_v37 = vsel %vm341_vm0, %v495_v7, %v497_v43  ;;  %v574_v52 = vshll.u32 %v1217_v19, 16 }
  0x38   : > { %474 = vrot.lane.b32.xlu0 %v417_v35, %s1318_s28  ;;  %v1636_v22 = vsel %vm256_vm1, %v428_v5, %v432_v6  ;;  %v436_v23 = vor.u32 %v434_v62, %v432_v6  ;;  %v285_v35 = vshrl.u32 %v1553_v27, 16  ;;  %v568_v45 = vrot.slane %v566_v17, 1  ;;  %v1218_v62 = vld [vmem:[%s1981_s1 + $0x10] ss:$0 sps:$4 sm:$0x33]  }
  0x39   : > { %482 = vrot.lane.b32.xlu1 %v449_v34, %s1318_s28  ;;  %v564_v28 = vor.u32 %v562_v58, %v1619_v0  ;;  %v317_v34 = vshrl.u32 %v1549_v25, 16  ;;  %v598_v53 = vrot.slane %v1609_v26, 1  ;;  %v600_v43 = vrot.slane %v1217_v19, 1  ;;  %1112 = vmatprep.subr.msk.bf16.mxu0 %vm798_vm2, %v1218_v62  ;;  %v1219_v19 = vld [vmem:[%s1981_s1 + $0x8] sm:$0xff]  }
  0x3a   : > { %v1651_v44 = vsel %vm256_vm1, %v436_v23, %v1537_v2  ;;  %v283_v55 = vrot.slane %v281_v20, 1  ;;  %v576_v5 = vrot.slane %v574_v52, 1  ;;  %v800_v6 = vsel %vm798_vm2, %v1218_v62, 0  ;;  %1113 = vmatprep.subr.msk.bf16.mxu1 %vm798_vm2, %v1218_v62 }
  0x3b   : > { %v1665_v15 = vsel %vm341_vm0, %v596_v49, %v598_v53  ;;  %v1668_v58 = vsel %vm341_vm0, %v598_v53, %v600_v43  ;;  %v554_v17 = vshrl.u32 %v1630_v12, 16  ;;  %1085 = vmatpush3.bf16.msra.mxu0 %v800_v6  ;;  %1109 = vmatpush3.bf16.msra.mxu1 %v800_v6  ;;  %v1042_v43 = vcombine.low %v1509_v51, %v1509_v51 }
  0x3c   : > { %476 = vrot.lane.b32.xlu0 %v425_v46, %s1318_s28  ;;  %v570_v46 = vshrl.u32 %v1609_v26, 16  ;;  %1086 = vmatprep.subr.bf16.mxu0 %v1219_v19 }
  0x3d   : > { %484 = vrot.lane.b32.xlu1 %v457_v42, %s1318_s28  ;;  %v1647_v42 = vrot.slane %v313_v63, 1  ;;  %1107 = vmatprep.subr.bf16.mxu1 %v1219_v19  ;;  %v357_v51 = vrot.slane %v1042_v43, 1 }
  0x3e   : > { %v572_v2 = vor.u32 %v570_v46, %v568_v45  ;;  %v277_v46 = vshrl.u32 %v1446_v13, 16 }
  0x3f   : > { %v319_v7 = vor.u32 %v317_v34, %v1647_v42  ;;  %1087 = vmatpush3.bf16.msra.mxu0 %v1219_v19  ;;  %1110 = vmatpush3.bf16.msra.mxu1 %v1219_v19  ;;  %v1220_v34 = vld [vmem:[%s1981_s1] sm:$0xff]  }
  0x40   : > { %507 = vrot.lane.b32.xlu0 %v492_v56, %s1319_s29  ;;  %v1660_v56 = vsel %vm256_vm1, %v564_v28, %v568_v45  ;;  %v1678_v63 = vsel %vm256_vm1, %v572_v2, %v576_v5  ;;  %1088 = vmatprep.subr.bf16.mxu0 %v1220_v34  ;;  %v279_v53 = vor.u32 %v277_v46, %v1479_v33  ;;  %v321_v2 = vshll.u32 %v1042_v43, 16 }
  0x41   : > { %515 = vrot.lane.b32.xlu1 %v500_v21, %s1319_s29  ;;  %v550_v21 = vshll.u32 %v1630_v12, 16  ;;  %1108 = vmatprep.subr.bf16.mxu1 %v1220_v34 }
  0x42   : > { %v323_v33 = vrot.slane %v321_v2, 1 }
  0x43   : > { %1089 = vmatpush3.bf16.msra.mxu0 %v1220_v34  ;;  %1111 = vmatpush3.bf16.msra.mxu1 %v1220_v34 }
  0x44   : > { %509 = vrot.lane.b32.xlu0 %v494_v11, %s1319_s29  ;;  %v287_v11 = vor.u32 %v285_v35, %v283_v55  ;;  %v594_v35 = vrot.slane %v1630_v12, 1 }
  0x45   : > { %517 = vrot.lane.b32.xlu1 %v502_v9, %s1319_s29  ;;  %v552_v9 = vrot.slane %v550_v21, 1  ;;  %v284_v21 = vsel %vm256_vm1, %v279_v53, %v283_v55  ;;  %v1051_v55 = vcombine.low %v1563_v32, %v1563_v32 }
  0x46   : > { %v292_v23 = vsel %vm256_vm1, %v287_v11, %v1500_v48  ;;  %v309_v48 = vshrl.u32 %v1427_v3, 16  ;;  %v595_v52 = vsel %vm341_vm0, %v1572_v40, %v594_v35 }
  0x47   : > { %v553_v20 = vsel %vm256_vm1, %v319_v7, %v552_v9  ;;  %v556_v28 = vor.u32 %v554_v17, %v552_v9  ;;  %v505_v6 = vrot.slane %v1051_v55, 1 }
  0x48   : > { %530 = vrot.lane.b32.xlu0 %v1553_v27, %s1320_s6 }
  0x49   : > { %538 = vrot.lane.b32.xlu1 %v1549_v25, %s1320_s6  ;;  %v561_v45 = vsel %vm256_vm1, %v556_v28, %v1619_v0  ;;  %v350_v0 = vsel %vm341_vm0, %v347_v41, %v349_v24  ;;  %v597_v24 = vsel %vm341_vm0, %v594_v35, %v596_v49  ;;  %v358_v41 = vsel %vm341_vm0, %v1572_v40, %v357_v51 }
  0x4c   : > { %532 = vrot.lane.b32.xlu0 %v1456_v16, %s1320_s6 }
  0x4d   : > { %540 = vrot.lane.b32.xlu1 %v1630_v12, %s1320_s6  ;;  %v311_v12 = vor.u32 %v309_v48, %v1498_v47  ;;  %v324_v47 = vsel %vm256_vm1, %v319_v7, %v323_v33 }
  0x50   : > { %578 = vrot.lane.b32.xlu0 %v292_v23, %s1321_s11 }
  0x51   : > { %586 = vrot.lane.b32.xlu1 %v553_v20, %s1321_s11 }
  0x54   : > { %580 = vrot.lane.b32.xlu0 %v1535_v1, %s1321_s11  ;;  %v316_v1 = vsel %vm256_vm1, %v311_v12, %v1647_v42  ;;  %v1050_v42 = vcombine.low %v1613_v57, %v1560_v30  ;;  %v470_v57 = vshll.u32 %v1051_v55, 16 }
  0x55   : > { %588 = vrot.lane.b32.xlu1 %v561_v45, %s1321_s11 }
  0x56   : > { %v462_v49 = vshll.u32 %v1050_v42, 16  ;;  %v466_v30 = vshrl.u32 %v1050_v42, 16  ;;  %v472_v32 = vrot.slane %v470_v57, 1 }
  0x58   : > { %602 = vrot.lane.b32.xlu0 %v350_v0, %s1322_s20 }
  0x59   : > { %610 = vrot.lane.b32.xlu1 %v595_v52, %s1322_s20 }
  0x5c   : > { %329 = vrot.lane.b32.xlu0 %v284_v21, %s1317_s27 }
  0x5d   : > { %337 = vrot.lane.b32.xlu1 %v316_v1, %s1317_s27 }
  0x60   : > { %604 = vrot.lane.b32.xlu0 %v1476_v31, %s1322_s20  ;;  %v458_v31 = vshrl.u32 %v1525_v60, 16 }
  0x61   : > { %612 = vrot.lane.b32.xlu1 %v597_v24, %s1322_s20 }
  0x62   : > { %v460_v40 = vor.u32 %v458_v31, %v1557_v29  ;;  %v503_v29 = vrot.slane %v1050_v42, 1 }
  0x64   : > { %331 = vrot.lane.b32.xlu0 %v292_v23, %s1317_s27 }
  0x65   : > { %339 = vrot.lane.b32.xlu1 %v324_v47, %s1317_s27  ;;  %s1323_s27 = smov [#allocation2]  }
  0x68   : > { %363 = vrot.lane.b32.xlu0 %v1595_v4, %s1316_s24  ;;  %v464_v4 = vrot.slane %v462_v49, 1 }
  0x69   : > { %371 = vrot.lane.b32.xlu1 %v1588_v50, %s1316_s24 }
  0x6a   : > { %v465_v5 = vsel %vm256_vm1, %v460_v40, %v464_v4  ;;  %v468_v62 = vor.u32 %v466_v30, %v464_v4 }
  0x6c   : > { %365 = vrot.lane.b32.xlu0 %v350_v0, %s1316_s24 }
  0x6d   : > { %373 = vrot.lane.b32.xlu1 %v358_v41, %s1316_s24 }
  0x70   : > { %391 = vrot.lane.b32.xlu0 %v1529_v61, %s1315_s21  ;;  %v473_v61 = vsel %vm256_vm1, %v468_v62, %v472_v32 }
  0x71   : > { %399 = vrot.lane.b32.xlu1 %v1525_v60, %s1315_s21 }
  0x74   : > { %393 = vrot.lane.b32.xlu0 %v1600_v10, %s1315_s21  ;;  %v504_v10 = vsel %vm341_vm0, %v501_v54, %v503_v29 }
  0x75   : > { %401 = vrot.lane.b32.xlu1 %v1050_v42, %s1315_s21  ;;  %s175_s21 = sand.u32 1, %s1289_s13  }
  0x78   : > { %478 = vrot.lane.b32.xlu0 %v1636_v22, %s1318_s28  ;;  %v506_v22 = vsel %vm341_vm0, %v503_v29, %v505_v6 }
  0x79   : > { %486 = vrot.lane.b32.xlu1 %v465_v5, %s1318_s28 }
  0x7c   : > { %480 = vrot.lane.b32.xlu0 %v1651_v44, %s1318_s28 }
  0x7d   : > { %488 = vrot.lane.b32.xlu1 %v473_v61, %s1318_s28  ;;  %s1225_s28 = sshll.u32 %s1323_s27, 4  ;;  %s1226_s28 = int_to_ptr.vmem [resolvable:$false] %s1225_s28 }
  0x80   : > { %511 = vrot.lane.b32.xlu0 %v1642_v36, %s1319_s29 }
  0x81   : > { %519 = vrot.lane.b32.xlu1 %v504_v10, %s1319_s29 }
  0x84   : > { %513 = vrot.lane.b32.xlu0 %v1645_v37, %s1319_s29 }
  0x85   : > { %521 = vrot.lane.b32.xlu1 %v506_v22, %s1319_s29  ;;  %s1030_s29 = sshll.u32 %s175_s21, 7 }
  0x86   : > { %s1886_s4 = scalar_lea.vmem [#allocation2], %s1030_s29  ;;  %s1227_s29 = scalar_lea.vmem %s1226_s28, 4096 }
  0x87   : > { %s947_s16 = sshll.u32 %s1886_s4, 4  ;;  %s1922_s16 = int_to_ptr.vmem [resolvable:$true] %s947_s16 }
  0x88   : > { %534 = vrot.lane.b32.xlu0 %v1437_v8, %s1320_s6  ;;  %p1228_p2 = scmp.lt.s32.totalorder %s1922_s16, %s1226_s28 }
  0x89   : > { %542 = vrot.lane.b32.xlu1 %v1569_v38, %s1320_s6 }
  0x8c   : > { %536 = vrot.lane.b32.xlu0 %v1427_v3, %s1320_s6 }
  0x8d   : > { %544 = vrot.lane.b32.xlu1 %v1609_v26, %s1320_s6  ;;  %s1069_s6 = sshll.u32 %s1297_s15, 4 }
  0x8e   : > { %s944_s7 = sadd.s32 %s1115_s5, %s1069_s6 }
  0x8f   : > { %s1070_s15 = sshll.u32 %s944_s7, 7 }
  0x90   : > { %582 = vrot.lane.b32.xlu0 %v1522_v59, %s1321_s11  ;;  %s1918_s10 = scalar_lea.hbm %s1983_s3, %s1070_s15 }
  0x91   : > { %590 = vrot.lane.b32.xlu1 %v1660_v56, %s1321_s11  ;;  %v396_v60 = vpop.permute.xlu1 %395 }
  0x92   : > { %v388_v54 = vpop.permute.xlu0 %387 }
  0x94   : > { %584 = vrot.lane.b32.xlu0 %v316_v1, %s1321_s11 }
  0x95   : > { %592 = vrot.lane.b32.xlu1 %v1678_v63, %s1321_s11  ;;  %s1928_s11 = scalar_lea.sflag [#allocation3], %s175_s21 }
  0x96   : > { %v360_v36 = vpop.permute.xlu0 %359 }
  0x97   : > { %v368_v38 = vpop.permute.xlu1 %367 }
  0x98   : > { %606 = vrot.lane.b32.xlu0 %v1489_v39, %s1322_s20 }
  0x99   : > { %614 = vrot.lane.b32.xlu1 %v1665_v15, %s1322_s20 }
  0x9a   : > { %v362_v37 = vpop.permute.xlu0 %361 }
  0x9b   : > { %v370_v26 = vpop.permute.xlu1 %369 }
  0x9c   : > { %608 = vrot.lane.b32.xlu0 %v1588_v50, %s1322_s20 }
  0x9d   : > { %616 = vrot.lane.b32.xlu1 %v1668_v58, %s1322_s20  ;;  %s1221_s20 = scalar_lea.vmem %s1922_s16, 2048 }
  0x9e   : > { %v326_v44 = vpop.permute.xlu0 %325  ;;  %p1222_p13 = scmp.ne.s32.totalorder %s1922_s16, %s1221_s20  ;;  %p1229_p4 = scmp.lt.s32.totalorder %s1227_s29, %s1221_s20 }
  0x9f   : > { %v328_v59 = vpop.permute.xlu1 %327  ;;  %v620_v50 = vsel %vm618_vm3, %v1460_v18, %v326_v44 }
  0xa0   : > { %v637_v0 = vsel %vm635_vm4, %v620_v50, %v360_v36  ;;  %v622_v51 = vsel %vm618_vm3, %v1448_v14, %v328_v59  ;;  %p1223_p0 = pnand %p1222_p13, %p1396_p3  ;;  %p1230_p5 = por %p1229_p4, %p1228_p2 }
  0xa1   : > { %v654_v43 = vsel %vm652_vm5, %v637_v0, %v388_v54  ;;  %v639_v14 = vsel %vm635_vm4, %v622_v51, %v362_v37 }
  0xa2   : > { %v334_v63 = vpop.permute.xlu0 %333  ;;  %p1224_p1 = pneg %p1223_p0 }
  0xa3   : > { %v336_v56 = vpop.permute.xlu1 %335  ;;  %v628_v48 = vsel %vm618_vm3, %v1456_v16, %v334_v63 }
  0xa4   : > { %v645_v12 = vsel %vm635_vm4, %v628_v48, %v368_v38  ;;  %v630_v41 = vsel %vm618_vm3, %v1437_v8, %v336_v56  ;;  %p1231_p6 = pnand %p1230_p5, %p1224_p1 }
  0xa5   : > { %v662_v53 = vsel %vm652_vm5, %v645_v12, %v396_v60  ;;  %v647_v30 = vsel %vm635_vm4, %v630_v41, %v370_v26 }
  0xa6   : > { %v390_v9 = vpop.permute.xlu0 %389 }
  0xa7   : > { %v398_v7 = vpop.permute.xlu1 %397  ;;  %v656_v57 = vsel %vm652_vm5, %v639_v14, %v390_v9 }
  0xa8   : > { %v664_v8 = vsel %vm652_vm5, %v647_v30, %v398_v7 }
  0xaa   : > { %v475_v17 = vpop.permute.xlu0 %474 }
  0xab   : > { %v483_v11 = vpop.permute.xlu1 %482  ;;  %v671_v16 = vsel %vm669_vm6, %v654_v43, %v475_v17 }
  0xac   : > { %v679_v18 = vsel %vm669_vm6, %v662_v53, %v483_v11 }
  0xae   : > { %v477_v19 = vpop.permute.xlu0 %476 }
  0xaf   : > { %v485_v15 = vpop.permute.xlu1 %484  ;;  %v673_v61 = vsel %vm669_vm6, %v656_v57, %v477_v19 }
  0xb0   : > { %v681_v32 = vsel %vm669_vm6, %v664_v8, %v485_v15 }
  0xb2   : > { %v508_v39 = vpop.permute.xlu0 %507 }
  0xb3   : > { %v516_v20 = vpop.permute.xlu1 %515  ;;  %v688_v24 = vsel %vm686_vm7, %v671_v16, %v508_v39 }
  0xb4   : > { %v696_v2 = vsel %vm686_vm7, %v679_v18, %v516_v20 }
  0xb6   : > { %v510_v28 = vpop.permute.xlu0 %509 }
  0xb7   : > { %v518_v23 = vpop.permute.xlu1 %517  ;;  %v690_v10 = vsel %vm686_vm7, %v673_v61, %v510_v28 }
  0xb8   : > { %v698_v29 = vsel %vm686_vm7, %v681_v32, %v518_v23 }
  0xba   : > { %v531_v35 = vpop.permute.xlu0 %530 }
  0xbb   : > { %v539_v34 = vpop.permute.xlu1 %538  ;;  %v705_v47 = vsel %vm703_vm8, %v688_v24, %v531_v35 }
  0xbc   : > { %v713_v33 = vsel %vm703_vm8, %v696_v2, %v539_v34 }
  0xbe   : > { %v533_v45 = vpop.permute.xlu0 %532 }
  0xbf   : > { %v541_v58 = vpop.permute.xlu1 %540  ;;  %v707_v22 = vsel %vm703_vm8, %v690_v10, %v533_v45 }
  0xc0   : > { %v715_v6 = vsel %vm703_vm8, %v698_v29, %v541_v58 }
  0xc2   : > { %v579_v52 = vpop.permute.xlu0 %578 }
  0xc3   : > { %v587_v46 = vpop.permute.xlu1 %586  ;;  %v722_v31 = vsel %vm720_vm9, %v705_v47, %v579_v52 }
  0xc4   : > { %v730_v42 = vsel %vm720_vm9, %v713_v33, %v587_v46 }
  0xc6   : > { %v581_v21 = vpop.permute.xlu0 %580 }
  0xc7   : > { %v589_v1 = vpop.permute.xlu1 %588  ;;  %v724_v54 = vsel %vm720_vm9, %v707_v22, %v581_v21 }
  0xc8   : > { %v732_v60 = vsel %vm720_vm9, %v715_v6, %v589_v1 }
  0xca   : > { %v603_v55 = vpop.permute.xlu0 %602 }
  0xcb   : > { %v611_v49 = vpop.permute.xlu1 %610  ;;  %v739_v40 = vsel %vm737_vm10, %v722_v31, %v603_v55 }
  0xcc   : > { %v747_v4 = vsel %vm737_vm10, %v730_v42, %v611_v49  ;;  %1090 = vmatprep.mubr.msk.bf16.mxu0 %vm781_vm11, %v739_v40 }
  0xcd   : > { %1098 = vmatprep.mubr.msk.bf16.mxu1 %vm781_vm11, %v747_v4 }
  0xce   : > { %v330_v62 = vpop.permute.xlu0 %329 }
  0xcf   : > { %v338_v5 = vpop.permute.xlu1 %337  ;;  %v624_v63 = vsel %vm618_vm3, %v1446_v13, %v330_v62 }
  0xd0   : > { %v632_v56 = vsel %vm618_vm3, %v1427_v3, %v338_v5 }
  0xd2   : > { %v605_v36 = vpop.permute.xlu0 %604 }
  0xd3   : > { %v613_v38 = vpop.permute.xlu1 %612  ;;  %v741_v37 = vsel %vm737_vm10, %v724_v54, %v605_v36 }
  0xd4   : > { %v749_v26 = vsel %vm737_vm10, %v732_v60, %v613_v38  ;;  %1091 = vmatmul.mubr.msk.bf16.vlgmr.msra.gmra.mxu0 %vm781_vm11, %v741_v37 }
  0xd5   : > { %1099 = vmatmul.mubr.msk.bf16.vlgmr.msra.gmra.mxu1 %vm781_vm11, %v749_v26  ;;  %v1878_v26 = vld [vmem:[%s1982_s2] ss:$0 sm:$0xff] }
  0xd6   : > { %v332_v44 = vpop.permute.xlu0 %331 }
  0xd7   : > { %v340_v59 = vpop.permute.xlu1 %339  ;;  %v626_v19 = vsel %vm618_vm3, %v1553_v27, %v332_v44 }
  0xd8   : > { %v634_v15 = vsel %vm618_vm3, %v1549_v25, %v340_v59 }
  0xda   : > { %v364_v9 = vpop.permute.xlu0 %363 }
  0xdb   : > { %v372_v7 = vpop.permute.xlu1 %371  ;;  %v641_v17 = vsel %vm635_vm4, %v624_v63, %v364_v9 }
  0xdc   : > { %v649_v11 = vsel %vm635_vm4, %v632_v56, %v372_v7 }
  0xde   : > { %v366_v39 = vpop.permute.xlu0 %365 }
  0xdf   : > { %v374_v20 = vpop.permute.xlu1 %373  ;;  %v643_v3 = vsel %vm635_vm4, %v626_v19, %v366_v39 }
  0xe0   : > { %v651_v23 = vsel %vm635_vm4, %v634_v15, %v374_v20 }
  0xe2   : > { %v392_v13 = vpop.permute.xlu0 %391 }
  0xe3   : > { %v400_v28 = vpop.permute.xlu1 %399  ;;  %v658_v16 = vsel %vm652_vm5, %v641_v17, %v392_v13 }
  0xe4   : > { %v666_v18 = vsel %vm652_vm5, %v649_v11, %v400_v28 }
  0xe6   : > { %v394_v35 = vpop.permute.xlu0 %393 }
  0xe7   : > { %v402_v34 = vpop.permute.xlu1 %401  ;;  %v660_v55 = vsel %vm652_vm5, %v643_v3, %v394_v35 }
  0xe8   : > { %v668_v49 = vsel %vm652_vm5, %v651_v23, %v402_v34 }
  0xea   : > { %v479_v45 = vpop.permute.xlu0 %478 }
  0xeb   : > { %v487_v58 = vpop.permute.xlu1 %486  ;;  %v675_v47 = vsel %vm669_vm6, %v658_v16, %v479_v45 }
  0xec   : > { %v683_v33 = vsel %vm669_vm6, %v666_v18, %v487_v58 }
  0xee   : > { %v481_v48 = vpop.permute.xlu0 %480 }
  0xef   : > { %v489_v50 = vpop.permute.xlu1 %488  ;;  %v677_v57 = vsel %vm669_vm6, %v660_v55, %v481_v48 }
  0xf0   : > { %v685_v8 = vsel %vm669_vm6, %v668_v49, %v489_v50 }
  0xf2   : > { %v512_v52 = vpop.permute.xlu0 %511 }
  0xf3   : > { %v520_v46 = vpop.permute.xlu1 %519  ;;  %v692_v41 = vsel %vm686_vm7, %v675_v47, %v512_v52 }
  0xf4   : > { %v700_v51 = vsel %vm686_vm7, %v683_v33, %v520_v46 }
  0xf6   : > { %v514_v0 = vpop.permute.xlu0 %513 }
  0xf7   : > { %v522_v25 = vpop.permute.xlu1 %521  ;;  %v694_v61 = vsel %vm686_vm7, %v677_v57, %v514_v0 }
  0xf8   : > { %v702_v32 = vsel %vm686_vm7, %v685_v8, %v522_v25 }
  0xfa   : > { %v535_v27 = vpop.permute.xlu0 %534 }
  0xfb   : > { %v543_v12 = vpop.permute.xlu1 %542  ;;  %v709_v31 = vsel %vm703_vm8, %v692_v41, %v535_v27 }
  0xfc   : > { %v717_v42 = vsel %vm703_vm8, %v700_v51, %v543_v12 }
  0xfe   : > { %v537_v43 = vpop.permute.xlu0 %536 }
  0xff   : > { %v545_v53 = vpop.permute.xlu1 %544  ;;  %v711_v10 = vsel %vm703_vm8, %v694_v61, %v537_v43 }
 0x100   : > { %v719_v29 = vsel %vm703_vm8, %v702_v32, %v545_v53 }
 0x102   : > { %v583_v21 = vpop.permute.xlu0 %582 }
 0x103   : > { %v591_v1 = vpop.permute.xlu1 %590  ;;  %v726_v4 = vsel %vm720_vm9, %v709_v31, %v583_v21 }
 0x104   : > { %v734_v40 = vsel %vm720_vm9, %v717_v42, %v591_v1 }
 0x106   : > { %v585_v24 = vpop.permute.xlu0 %584 }
 0x107   : > { %v593_v2 = vpop.permute.xlu1 %592  ;;  %v728_v22 = vsel %vm720_vm9, %v711_v10, %v585_v24 }
 0x108   : > { %v736_v6 = vsel %vm720_vm9, %v719_v29, %v593_v2 }
 0x10a   : > { %v607_v14 = vpop.permute.xlu0 %606 }
 0x10b   : > { %v615_v30 = vpop.permute.xlu1 %614  ;;  %v743_v62 = vsel %vm737_vm10, %v726_v4, %v607_v14 }
 0x10c   : > { %v751_v5 = vsel %vm737_vm10, %v734_v40, %v615_v30  ;;  %1094 = vmatprep.mubr.msk.bf16.mxu0 %vm781_vm11, %v743_v62 }
 0x10d   : > { %1102 = vmatprep.mubr.msk.bf16.mxu1 %vm781_vm11, %v751_v5 }
 0x10e   : > { %v609_v54 = vpop.permute.xlu0 %608 }
 0x10f   : > { %v617_v60 = vpop.permute.xlu1 %616  ;;  %v745_v36 = vsel %vm737_vm10, %v728_v22, %v609_v54 }
 0x110   : > { %v753_v38 = vsel %vm737_vm10, %v736_v6, %v617_v60  ;;  %1095 = vmatmul.mubr.msk.bf16.gmra.mxu0 %vm781_vm11, %v745_v36 }
 0x111   : > { %1103 = vmatmul.mubr.msk.bf16.gmra.mxu1 %vm781_vm11, %v753_v38 }
 0x194   : > { %v1092_v37 = vpop.f32.mrf.mxu0 }
 0x195   : > { %v1100_v59 = vpop.f32.mrf.mxu1  ;;  %v845_v44 = vadd.f32 %v1092_v37, %v1878_v26 }
 0x196   : > { %v877_v56 = vadd.f32 %v1100_v59, %v1878_v26  ;;  %v836_v63 = vpop.f32.mrf.mxu0 }
 0x197   : > { %v868_v7 = vpop.f32.mrf.mxu1  ;;  %v901_v9 = vmax.f32 %v845_v44, 0.0  ;;  %v837_v17 = vadd.f32 %v1878_v26, %v836_v63 }
 0x198   : > { %v909_v11 = vmax.f32 %v877_v56, 0.0  ;;  %v869_v15 = vadd.f32 %v1878_v26, %v868_v7  ;;  %v1093_v19 = vpop.f32.mrf.mxu0 }
 0x199   : > { %v1101_v20 = vpop.f32.mrf.mxu1  ;;  %917 = vst [vmem:[%s1886_s4 + $0x10] sm:$0xff] %v901_v9  ;;  %v899_v39 = vmax.f32 %v837_v17, 0.0  ;;  %v848_v3 = vadd.f32 %v1093_v19, %v1878_v26 }
 0x19a   : > { %925 = vst [vmem:[%s1886_s4 + $0x50] sm:$0xff] %v909_v11  ;;  %v907_v23 = vmax.f32 %v869_v15, 0.0  ;;  %v880_v28 = vadd.f32 %v1101_v20, %v1878_v26  ;;  %v839_v13 = vpop.f32.mrf.mxu0 }
 0x19b   : > { %v871_v34 = vpop.f32.mrf.mxu1  ;;  %915 = vst [vmem:[%s1886_s4] sm:$0xff] %v899_v39  ;;  %v902_v35 = vmax.f32 %v848_v3, 0.0  ;;  %v840_v45 = vadd.f32 %v1878_v26, %v839_v13 }
 0x19c   : > { %923 = vst [vmem:[%s1886_s4 + $0x40] sm:$0xff] %v907_v23  ;;  %v910_v58 = vmax.f32 %v880_v28, 0.0  ;;  %v872_v50 = vadd.f32 %v1878_v26, %v871_v34 }
 0x19d   : > { %918 = vst [vmem:[%s1886_s4 + $0x18] sm:$0xff] %v902_v35  ;;  %v900_v48 = vmax.f32 %v840_v45, 0.0 }
 0x19e   : > { %926 = vst [vmem:[%s1886_s4 + $0x58] sm:$0xff] %v910_v58  ;;  %v908_v46 = vmax.f32 %v872_v50, 0.0 }
 0x19f   : > { %916 = vst [vmem:[%s1886_s4 + $0x8] sm:$0xff] %v900_v48 }
 0x1a0   : > { %924 = vst [vmem:[%s1886_s4 + $0x48] sm:$0xff] %v908_v46 }
 0x1d0   : > { %v1096_v52 = vpop.f32.mrf.mxu0 }
 0x1d1   : > { %v1104_v25 = vpop.f32.mrf.mxu1  ;;  %v861_v0 = vadd.f32 %v1096_v52, %v1878_v26 }
 0x1d2   : > { %v893_v12 = vadd.f32 %v1104_v25, %v1878_v26  ;;  %v852_v27 = vpop.f32.mrf.mxu0 }
 0x1d3   : > { %v884_v53 = vpop.f32.mrf.mxu1  ;;  %v905_v43 = vmax.f32 %v861_v0, 0.0  ;;  %v853_v21 = vadd.f32 %v1878_v26, %v852_v27 }
 0x1d4   : > { %v913_v1 = vmax.f32 %v893_v12, 0.0  ;;  %v885_v18 = vadd.f32 %v1878_v26, %v884_v53  ;;  %v1097_v16 = vpop.f32.mrf.mxu0 }
 0x1d5   : > { %v1105_v2 = vpop.f32.mrf.mxu1  ;;  %921 = vst [vmem:[%s1886_s4 + $0x30] sm:$0xff] %v905_v43  ;;  %v903_v24 = vmax.f32 %v853_v21, 0.0  ;;  %v864_v47 = vadd.f32 %v1097_v16, %v1878_v26 }
 0x1d6   : > { %929 = vst [vmem:[%s1886_s4 + $0x70] sm:$0xff] %v913_v1  ;;  %v911_v33 = vmax.f32 %v885_v18, 0.0  ;;  %v896_v51 = vadd.f32 %v1105_v2, %v1878_v26  ;;  %v855_v41 = vpop.f32.mrf.mxu0 }
 0x1d7   : > { %v887_v42 = vpop.f32.mrf.mxu1  ;;  %919 = vst [vmem:[%s1886_s4 + $0x20] sm:$0xff] %v903_v24  ;;  %v906_v31 = vmax.f32 %v864_v47, 0.0  ;;  %v856_v55 = vadd.f32 %v1878_v26, %v855_v41 }
 0x1d8   : > { %927 = vst [vmem:[%s1886_s4 + $0x60] sm:$0xff] %v911_v33  ;;  %v914_v49 = vmax.f32 %v896_v51, 0.0  ;;  %v888_v40 = vadd.f32 %v1878_v26, %v887_v42 }
 0x1d9   : > { %922 = vst [vmem:[%s1886_s4 + $0x38] sm:$0xff] %v906_v31  ;;  %v904_v4 = vmax.f32 %v856_v55, 0.0 }
 0x1da   : > { %930 = vst [vmem:[%s1886_s4 + $0x78] sm:$0xff] %v914_v49  ;;  %v912_v30 = vmax.f32 %v888_v40, 0.0 }
 0x1db   : > { %920 = vst [vmem:[%s1886_s4 + $0x28] sm:$0xff] %v904_v4 }
 0x1dc   : > { %928 = vst [vmem:[%s1886_s4 + $0x68] sm:$0xff] %v912_v30 }
 0x1dd   : > { %1234 = shalt.err (!%p1231_p6)
}
 0x1de   : > { %s1235_s21 = scalar_lea.hbm %s1918_s10, 2048  ;;  %s1239_s6 = scalar_lea.hbm %s1983_s3, 12288 }
 0x1df   : > { %p1236_p7 = scmp.ne.s32.totalorder %s1918_s10, %s1235_s21  ;;  %p1240_p11 = scmp.lt.s32.totalorder %s1918_s10, %s1983_s3 }
 0x1e0   : > { %p1241_p12 = scmp.lt.s32.totalorder %s1239_s6, %s1235_s21 }
 0x1e1   : > { %p1237_p9 = pnand %p1236_p7, %p1396_p3 }
 0x1e2   : > { %p1242_p13 = por %p1241_p12, %p1240_p11 }
 0x1e3   : > { %p1238_p10 = pneg %p1237_p9 }
 0x1e5   : > { %p1243_p0 = pnand %p1242_p13, %p1238_p10 }
 0x1e7   : > { %1246 = shalt.err (!%p1243_p0)
}
 0x1e8   : > { %s1324_s8 = smov 128  }
 0x1e9   : > { %1116 = dma.vmem_to_hbm [thread:$0]  (%p1396_p3), %s1922_s16, 2048, %s1918_s10, %s1928_s11, %s1324_s8, %s1324_s8, %s1316_s24  }
 0x1ea PF: > { %p1122_p1 = scmp.ge.s32.totalorder %s1313_s19, 2  ;;  %s962_s9 = sand.u32 1, %s1285_s12  }
 0x1eb   : > { %s963_s20 = scalar_lea.sflag [#allocation3], %s962_s9 }
 0x1ec   : > { %p1119_p2 = pnand %p1122_p1, %p1405_p8 }
 0x1ee   : > { %p1120_p4 = pneg %p1119_p2 }
 0x1f0   : > { %1280 = dma.done.wait (%p1120_p4), %s963_s20, 2048  }
 0x1f1   : > { %1282 = vsyncadd (%p1120_p4), %s963_s20, 4294965248  ;;  %s16_s19 = sadd.s32 1, %s1313_s19   ;;  %s1986_s12 = smov %s1289_s13 }
 0x1f2   : > { %p13_p5 = scmp.ge.s32.totalorder %s16_s19, 8   ;;  %s1987_s13 = smov %s1293_s14 }
 0x1f3   : > { %s1988_s14 = smov %s1414_s30  ;;  %s1989_s15 = smov %s1305_s17 }
 0x1f4   : > { %s1990_s16 = smov %s1309_s18  ;;  %s1991_s17 = smov %s1994_s22 }
 0x1f5   : > { %s1992_s18 = smov %s1998_s23  ;;  %15 = sbr.rel (!%p13_p5) target bundleno = 5 (0x5), region = 68 }
 0x1fa   :  { %968 = vsyncpa [#allocation3], 1 }
 0x1fb   :  { %970 = vsyncpa [#allocation3 + $0x1], 1 }

</bundles_post_ra>
